<compile_context>
chip_gen: v7x
topology: tpu7x:2x2x1
jax: 0.10.0
libtpu: 0.0.40
codegen_flags: <defaults>
</compile_context>

<pallas_src>
import functools

import jax
import jax.numpy as jnp
from jax.experimental import pallas as pl
from jax.experimental.pallas import tpu as pltpu


def _conv_kernel(x_ref, w_ref, b_ref, o_ref, xp_ref, col_ref, *,
                 pad, stride, h, w, h_out, w_out, c_in, c_out, ksize, nb):
    """One batch block (nb images) per grid step.

    x_ref  : (nb, Cin, H, W)      raw (unpadded) NCHW input block
    w_ref  : (Cout, KH*KW*Cin)    im2col-ordered weights
    b_ref  : (Cout, 1)            bias
    o_ref  : (nb, Cout, Ho*Wo)    lane-dense output block
    xp_ref : (nb, Cin, Hp, Wp)    VMEM scratch: reflection-padded input
    col_ref: (KH*KW*Cin, Ho*Wo)   VMEM scratch: im2col slab
    """
    # ---- ReflectionPad2d fused into the kernel (fills xp_ref) --------------
    xp_ref[:, :, pad:pad + h, pad:pad + w] = x_ref[...]
    for j in range(pad):
        # top rows:    padded row (pad-1-j)   <- input row (j+1)
        xp_ref[:, :, pad - 1 - j:pad - j, pad:pad + w] = (
            x_ref[:, :, j + 1:j + 2, :])
        # bottom rows: padded row (pad+h+j)   <- input row (h-2-j)
        xp_ref[:, :, pad + h + j:pad + h + j + 1, pad:pad + w] = (
            x_ref[:, :, h - 2 - j:h - 1 - j, :])
    for j in range(pad):
        # left cols:   padded col (pad-1-j)   <- padded col (pad+1+j)
        xp_ref[:, :, :, pad - 1 - j:pad - j] = (
            xp_ref[:, :, :, pad + 1 + j:pad + 2 + j])
        # right cols:  padded col (pad+w+j)   <- padded col (pad+w-2-j)
        xp_ref[:, :, :, pad + w + j:pad + w + j + 1] = (
            xp_ref[:, :, :, pad + w - 2 - j:pad + w - 1 - j])

    # ---- im2col + one fat-K MXU matmul per image ---------------------------
    w_mat = w_ref[...]                        # (Cout, KH*KW*Cin)
    bias = b_ref[...]                         # (Cout, 1) -> lane broadcast
    hw = h_out * w_out
    xpad = xp_ref[...]                        # (nb, Cin, Hp, Wp)
    for b in range(nb):
        xb = xpad[b]                          # (Cin, Hp, Wp)
        t = 0
        for kh in range(ksize):
            for kw in range(ksize):
                win = xb[:, kh:kh + (h_out - 1) * stride + 1:stride,
                            kw:kw + (w_out - 1) * stride + 1:stride]
                col_ref[t * c_in:(t + 1) * c_in, :] = win.reshape(c_in, hw)
                t += 1
        acc = jnp.dot(w_mat, col_ref[...],
                      preferred_element_type=jnp.float32)   # (Cout, Ho*Wo)
        o_ref[b] = (acc + bias).astype(o_ref.dtype)


def _pick_batch_block(n, max_per_step=8):
    """Batch several images per grid step, but keep >=2 steps when n > 1."""
    if n <= 1:
        return 1
    best = 1
    cap = min(max_per_step, n // 2)
    for cand in range(1, cap + 1):
        if n % cand == 0:
            best = cand
    return best


def conv_layer_forward(x_nchw, weight, bias, *, kernel_size, stride):
    """ReflectionPad2d(kernel_size // 2) followed by Conv2d(..., stride).

    x_nchw : (N, Cin, H, W)      float32
    weight : (Cout, Cin, KH, KW) float32 (PyTorch layout)
    bias   : (Cout,)             float32
    returns: (N, Cout, Ho, Wo)   float32
    """
    n, c_in, h, w = x_nchw.shape
    c_out = weight.shape[0]
    pad = kernel_size // 2
    assert pad < h and pad < w, "reflection pad must be smaller than spatial dims"

    hp, wp = h + 2 * pad, w + 2 * pad
    h_out = (hp - kernel_size) // stride + 1
    w_out = (wp - kernel_size) // stride + 1
    k_total = kernel_size * kernel_size * c_in
    hw = h_out * w_out

    # Weights in im2col (kh, kw, ci) order -> (Cout, KH*KW*Cin); bias (Cout, 1).
    w_mat = jnp.transpose(weight, (0, 2, 3, 1)).reshape(c_out, k_total)
    b2d = bias.reshape(c_out, 1)

    nb = _pick_batch_block(n)

    kernel = functools.partial(
        _conv_kernel, pad=pad, stride=stride, h=h, w=w, h_out=h_out,
        w_out=w_out, c_in=c_in, c_out=c_out, ksize=kernel_size, nb=nb)

    # Rough VMEM budget (double-buffered I/O blocks + scratch), clamped so it
    # is valid on every generation (v7x: 64 MiB per TensorCore).
    block_bytes = 4 * (2 * nb * c_in * h * w + 2 * nb * c_out * hw
                       + 2 * (c_out * k_total + c_out)
                       + nb * c_in * hp * wp + k_total * hw)
    vmem_limit = int(min(64 << 20, max(32 << 20, 2 * block_bytes)))

    out_flat = pl.pallas_call(
        kernel,
        out_shape=jax.ShapeDtypeStruct((n, c_out, hw), jnp.float32),
        grid_spec=pltpu.PrefetchScalarGridSpec(
            num_scalar_prefetch=0,
            grid=(n // nb,),
            in_specs=[
                pl.BlockSpec((nb, c_in, h, w), lambda b: (b, 0, 0, 0)),
                pl.BlockSpec((c_out, k_total), lambda b: (0, 0)),
                pl.BlockSpec((c_out, 1), lambda b: (0, 0)),
            ],
            out_specs=pl.BlockSpec((nb, c_out, hw), lambda b: (b, 0, 0)),
            scratch_shapes=[
                pltpu.VMEM((nb, c_in, hp, wp), jnp.float32),
                pltpu.VMEM((k_total, hw), jnp.float32),
            ],
        ),
        compiler_params=pltpu.CompilerParams(
            dimension_semantics=("parallel",),
            vmem_limit_bytes=vmem_limit),
    )(x_nchw, w_mat, b2d)

    # Metadata-only reshape back to NCHW (same memory layout).
    return out_flat.reshape(n, c_out, h_out, w_out)


def _reference(x_nchw, weight, bias, *, kernel_size, stride):
    """Pure-JAX reference (reflect pad + lax.conv) for correctness checking."""
    pad = kernel_size // 2
    x_pad = jnp.pad(x_nchw, ((0, 0), (0, 0), (pad, pad), (pad, pad)),
                    mode="reflect")
    out = jax.lax.conv_general_dilated(
        x_pad, weight, window_strides=(stride, stride), padding="VALID",
        dimension_numbers=("NCHW", "OIHW", "NCHW"))
    return out + bias.reshape(1, -1, 1, 1)


if __name__ == "__main__":
    # Small shapes consistent with the module: batch=2, C_in=4, C_out=8,
    # spatial=16x16, kernel_size=3, stride=1.
    batch, c_in, c_out = 2, 4, 8
    height = width = 16
    kernel_size, stride = 3, 1

    key = jax.random.PRNGKey(0)
    kx, kw, kb = jax.random.split(key, 3)
    x = jax.random.normal(kx, (batch, c_in, height, width), dtype=jnp.float32)
    fan_in = c_in * kernel_size * kernel_size
    bound = 1.0 / (fan_in ** 0.5)
    weight = jax.random.uniform(kw, (c_out, c_in, kernel_size, kernel_size),
                                minval=-bound, maxval=bound, dtype=jnp.float32)
    bias = jax.random.uniform(kb, (c_out,), minval=-bound, maxval=bound,
                              dtype=jnp.float32)

    out = conv_layer_forward(x, weight, bias,
                             kernel_size=kernel_size, stride=stride)
    out = jax.block_until_ready(out)

    ref = _reference(x, weight, bias, kernel_size=kernel_size, stride=stride)
    assert out.shape == ref.shape, (out.shape, ref.shape)
    assert jnp.allclose(out, ref, atol=1e-4, rtol=1e-4), "mismatch vs reference"

    print("KERNEL_OK")
</pallas_src>

<mosaic_0001>
module attributes {stable_mosaic.version = 11 : i64} {
  func.func @_conv_kernel(%arg0: i32, %arg1: memref<1x4x16x16xf32, #tpu.memory_space<vmem>>, %arg2: memref<8x36xf32, #tpu.memory_space<vmem>>, %arg3: memref<8x1xf32, #tpu.memory_space<vmem>>, %arg4: memref<1x8x256xf32, #tpu.memory_space<vmem>>, %arg5: memref<1x4x18x18xf32, #tpu.memory_space<vmem>>, %arg6: memref<36x256xf32, #tpu.memory_space<vmem>>) attributes {dimension_semantics = [#tpu.dimension_semantics<parallel>], iteration_bounds = array<i64: 2>, scalar_prefetch = 0 : i64, scratch_operands = 2 : i64, tpu.core_type = #tpu.core_type<tc>, window_params = [{transform_indices = @transform_0, window_bounds = array<i64: 1, 4, 16, 16>}, {pipeline_mode = #tpu.pipeline_mode<synchronous>, transform_indices = @transform_1, window_bounds = array<i64: 8, 36>}, {pipeline_mode = #tpu.pipeline_mode<synchronous>, transform_indices = @transform_2, window_bounds = array<i64: 8, 1>}, {transform_indices = @transform_3, window_bounds = array<i64: 1, 8, 256>}]} {
    %c0 = arith.constant 0 : index
    %c0_0 = arith.constant 0 : index
    %c0_1 = arith.constant 0 : index
    %c0_2 = arith.constant 0 : index
    %0 = vector.load %arg1[%c0, %c0_0, %c0_1, %c0_2] : memref<1x4x16x16xf32, #tpu.memory_space<vmem>>, vector<1x4x16x16xf32>
    %c0_3 = arith.constant 0 : index
    %c0_4 = arith.constant 0 : index
    %c1 = arith.constant 1 : index
    %c1_5 = arith.constant 1 : index
    %1 = vector.load %arg5[%c0_3, %c0_4, %c1, %c1_5] : memref<1x4x18x18xf32, #tpu.memory_space<vmem>>, vector<1x4x16x16xf32>
    tpu.vector_store %arg5[%c0_3, %c0_4, %c1, %c1_5], %0 {strides = array<i32>} : memref<1x4x18x18xf32, #tpu.memory_space<vmem>>, vector<1x4x16x16xf32>,
    %c0_6 = arith.constant 0 : index
    %c0_7 = arith.constant 0 : index
    %c1_8 = arith.constant 1 : index
    %c0_9 = arith.constant 0 : index
    %2 = vector.load %arg1[%c0_6, %c0_7, %c1_8, %c0_9] : memref<1x4x16x16xf32, #tpu.memory_space<vmem>>, vector<1x4x1x16xf32>
    %c0_10 = arith.constant 0 : index
    %c0_11 = arith.constant 0 : index
    %c0_12 = arith.constant 0 : index
    %c1_13 = arith.constant 1 : index
    %3 = vector.load %arg5[%c0_10, %c0_11, %c0_12, %c1_13] : memref<1x4x18x18xf32, #tpu.memory_space<vmem>>, vector<1x4x1x16xf32>
    tpu.vector_store %arg5[%c0_10, %c0_11, %c0_12, %c1_13], %2 {strides = array<i32>} : memref<1x4x18x18xf32, #tpu.memory_space<vmem>>, vector<1x4x1x16xf32>,
    %c0_14 = arith.constant 0 : index
    %c0_15 = arith.constant 0 : index
    %c14 = arith.constant 14 : index
    %c0_16 = arith.constant 0 : index
    %4 = vector.load %arg1[%c0_14, %c0_15, %c14, %c0_16] : memref<1x4x16x16xf32, #tpu.memory_space<vmem>>, vector<1x4x1x16xf32>
    %c0_17 = arith.constant 0 : index
    %c0_18 = arith.constant 0 : index
    %c17 = arith.constant 17 : index
    %c1_19 = arith.constant 1 : index
    %5 = vector.load %arg5[%c0_17, %c0_18, %c17, %c1_19] : memref<1x4x18x18xf32, #tpu.memory_space<vmem>>, vector<1x4x1x16xf32>
    tpu.vector_store %arg5[%c0_17, %c0_18, %c17, %c1_19], %4 {strides = array<i32>} : memref<1x4x18x18xf32, #tpu.memory_space<vmem>>, vector<1x4x1x16xf32>,
    %c0_20 = arith.constant 0 : index
    %c0_21 = arith.constant 0 : index
    %c0_22 = arith.constant 0 : index
    %c2 = arith.constant 2 : index
    %6 = vector.load %arg5[%c0_20, %c0_21, %c0_22, %c2] : memref<1x4x18x18xf32, #tpu.memory_space<vmem>>, vector<1x4x18x1xf32>
    %c0_23 = arith.constant 0 : index
    %c0_24 = arith.constant 0 : index
    %c0_25 = arith.constant 0 : index
    %c0_26 = arith.constant 0 : index
    %7 = vector.load %arg5[%c0_23, %c0_24, %c0_25, %c0_26] : memref<1x4x18x18xf32, #tpu.memory_space<vmem>>, vector<1x4x18x1xf32>
    tpu.vector_store %arg5[%c0_23, %c0_24, %c0_25, %c0_26], %6 {strides = array<i32>} : memref<1x4x18x18xf32, #tpu.memory_space<vmem>>, vector<1x4x18x1xf32>,
    %c0_27 = arith.constant 0 : index
    %c0_28 = arith.constant 0 : index
    %c0_29 = arith.constant 0 : index
    %c15 = arith.constant 15 : index
    %8 = vector.load %arg5[%c0_27, %c0_28, %c0_29, %c15] : memref<1x4x18x18xf32, #tpu.memory_space<vmem>>, vector<1x4x18x1xf32>
    %c0_30 = arith.constant 0 : index
    %c0_31 = arith.constant 0 : index
    %c0_32 = arith.constant 0 : index
    %c17_33 = arith.constant 17 : index
    %9 = vector.load %arg5[%c0_30, %c0_31, %c0_32, %c17_33] : memref<1x4x18x18xf32, #tpu.memory_space<vmem>>, vector<1x4x18x1xf32>
    tpu.vector_store %arg5[%c0_30, %c0_31, %c0_32, %c17_33], %8 {strides = array<i32>} : memref<1x4x18x18xf32, #tpu.memory_space<vmem>>, vector<1x4x18x1xf32>,
    %c0_34 = arith.constant 0 : index
    %c0_35 = arith.constant 0 : index
    %10 = vector.load %arg2[%c0_34, %c0_35] : memref<8x36xf32, #tpu.memory_space<vmem>>, vector<8x36xf32>
    %c0_36 = arith.constant 0 : index
    %c0_37 = arith.constant 0 : index
    %11 = vector.load %arg3[%c0_36, %c0_37] : memref<8x1xf32, #tpu.memory_space<vmem>>, vector<8x1xf32>
    %c0_38 = arith.constant 0 : index
    %c0_39 = arith.constant 0 : index
    %c0_40 = arith.constant 0 : index
    %c0_41 = arith.constant 0 : index
    %12 = vector.load %arg5[%c0_38, %c0_39, %c0_40, %c0_41] : memref<1x4x18x18xf32, #tpu.memory_space<vmem>>, vector<1x4x18x18xf32>
    %13 = vector.shape_cast %12 : vector<1x4x18x18xf32> to vector<4x18x18xf32>
    %14 = vector.extract_strided_slice %13 {offsets = [0, 0, 0], sizes = [4, 16, 16], strides = [1, 1, 1]} : vector<4x18x18xf32> to vector<4x16x16xf32>
    %15 = vector.shape_cast %14 : vector<4x16x16xf32> to vector<4x256xf32>
    %c0_42 = arith.constant 0 : index
    %c0_43 = arith.constant 0 : index
    %16 = vector.load %arg6[%c0_42, %c0_43] : memref<36x256xf32, #tpu.memory_space<vmem>>, vector<4x256xf32>
    tpu.vector_store %arg6[%c0_42, %c0_43], %15 {strides = array<i32>} : memref<36x256xf32, #tpu.memory_space<vmem>>, vector<4x256xf32>,
    %17 = vector.extract_strided_slice %13 {offsets = [0, 0, 1], sizes = [4, 16, 16], strides = [1, 1, 1]} : vector<4x18x18xf32> to vector<4x16x16xf32>
    %18 = vector.shape_cast %17 : vector<4x16x16xf32> to vector<4x256xf32>
    %c4 = arith.constant 4 : index
    %c0_44 = arith.constant 0 : index
    %19 = vector.load %arg6[%c4, %c0_44] : memref<36x256xf32, #tpu.memory_space<vmem>>, vector<4x256xf32>
    tpu.vector_store %arg6[%c4, %c0_44], %18 {strides = array<i32>} : memref<36x256xf32, #tpu.memory_space<vmem>>, vector<4x256xf32>,
    %20 = vector.extract_strided_slice %13 {offsets = [0, 0, 2], sizes = [4, 16, 16], strides = [1, 1, 1]} : vector<4x18x18xf32> to vector<4x16x16xf32>
    %21 = vector.shape_cast %20 : vector<4x16x16xf32> to vector<4x256xf32>
    %c8 = arith.constant 8 : index
    %c0_45 = arith.constant 0 : index
    %22 = vector.load %arg6[%c8, %c0_45] : memref<36x256xf32, #tpu.memory_space<vmem>>, vector<4x256xf32>
    tpu.vector_store %arg6[%c8, %c0_45], %21 {strides = array<i32>} : memref<36x256xf32, #tpu.memory_space<vmem>>, vector<4x256xf32>,
    %23 = vector.extract_strided_slice %13 {offsets = [0, 1, 0], sizes = [4, 16, 16], strides = [1, 1, 1]} : vector<4x18x18xf32> to vector<4x16x16xf32>
    %24 = vector.shape_cast %23 : vector<4x16x16xf32> to vector<4x256xf32>
    %c12 = arith.constant 12 : index
    %c0_46 = arith.constant 0 : index
    %25 = vector.load %arg6[%c12, %c0_46] : memref<36x256xf32, #tpu.memory_space<vmem>>, vector<4x256xf32>
    tpu.vector_store %arg6[%c12, %c0_46], %24 {strides = array<i32>} : memref<36x256xf32, #tpu.memory_space<vmem>>, vector<4x256xf32>,
    %26 = vector.extract_strided_slice %13 {offsets = [0, 1, 1], sizes = [4, 16, 16], strides = [1, 1, 1]} : vector<4x18x18xf32> to vector<4x16x16xf32>
    %27 = vector.shape_cast %26 : vector<4x16x16xf32> to vector<4x256xf32>
    %c16 = arith.constant 16 : index
    %c0_47 = arith.constant 0 : index
    %28 = vector.load %arg6[%c16, %c0_47] : memref<36x256xf32, #tpu.memory_space<vmem>>, vector<4x256xf32>
    tpu.vector_store %arg6[%c16, %c0_47], %27 {strides = array<i32>} : memref<36x256xf32, #tpu.memory_space<vmem>>, vector<4x256xf32>,
    %29 = vector.extract_strided_slice %13 {offsets = [0, 1, 2], sizes = [4, 16, 16], strides = [1, 1, 1]} : vector<4x18x18xf32> to vector<4x16x16xf32>
    %30 = vector.shape_cast %29 : vector<4x16x16xf32> to vector<4x256xf32>
    %c20 = arith.constant 20 : index
    %c0_48 = arith.constant 0 : index
    %31 = vector.load %arg6[%c20, %c0_48] : memref<36x256xf32, #tpu.memory_space<vmem>>, vector<4x256xf32>
    tpu.vector_store %arg6[%c20, %c0_48], %30 {strides = array<i32>} : memref<36x256xf32, #tpu.memory_space<vmem>>, vector<4x256xf32>,
    %32 = vector.extract_strided_slice %13 {offsets = [0, 2, 0], sizes = [4, 16, 16], strides = [1, 1, 1]} : vector<4x18x18xf32> to vector<4x16x16xf32>
    %33 = vector.shape_cast %32 : vector<4x16x16xf32> to vector<4x256xf32>
    %c24 = arith.constant 24 : index
    %c0_49 = arith.constant 0 : index
    %34 = vector.load %arg6[%c24, %c0_49] : memref<36x256xf32, #tpu.memory_space<vmem>>, vector<4x256xf32>
    tpu.vector_store %arg6[%c24, %c0_49], %33 {strides = array<i32>} : memref<36x256xf32, #tpu.memory_space<vmem>>, vector<4x256xf32>,
    %35 = vector.extract_strided_slice %13 {offsets = [0, 2, 1], sizes = [4, 16, 16], strides = [1, 1, 1]} : vector<4x18x18xf32> to vector<4x16x16xf32>
    %36 = vector.shape_cast %35 : vector<4x16x16xf32> to vector<4x256xf32>
    %c28 = arith.constant 28 : index
    %c0_50 = arith.constant 0 : index
    %37 = vector.load %arg6[%c28, %c0_50] : memref<36x256xf32, #tpu.memory_space<vmem>>, vector<4x256xf32>
    tpu.vector_store %arg6[%c28, %c0_50], %36 {strides = array<i32>} : memref<36x256xf32, #tpu.memory_space<vmem>>, vector<4x256xf32>,
    %38 = vector.extract_strided_slice %13 {offsets = [0, 2, 2], sizes = [4, 16, 16], strides = [1, 1, 1]} : vector<4x18x18xf32> to vector<4x16x16xf32>
    %39 = vector.shape_cast %38 : vector<4x16x16xf32> to vector<4x256xf32>
    %c32 = arith.constant 32 : index
    %c0_51 = arith.constant 0 : index
    %40 = vector.load %arg6[%c32, %c0_51] : memref<36x256xf32, #tpu.memory_space<vmem>>, vector<4x256xf32>
    tpu.vector_store %arg6[%c32, %c0_51], %39 {strides = array<i32>} : memref<36x256xf32, #tpu.memory_space<vmem>>, vector<4x256xf32>,
    %c0_52 = arith.constant 0 : index
    %c0_53 = arith.constant 0 : index
    %41 = vector.load %arg6[%c0_52, %c0_53] : memref<36x256xf32, #tpu.memory_space<vmem>>, vector<36x256xf32>
    %cst = arith.constant dense<0.000000e+00> : vector<8x256xf32>
    %42 = tpu.matmul %10, %41, %cst {dimension_numbers = #tpu.dot_dimension_numbers<[1], [0], [0], [1], [0, 0, 1, 1], [], []>} : vector<8x36xf32>, vector<36x256xf32>, vector<8x256xf32> -> vector<8x256xf32>
    %43 = vector.broadcast %11 : vector<8x1xf32> to vector<8x256xf32>
    %44 = arith.addf %42, %43 : vector<8x256xf32>
    %c0_54 = arith.constant 0 : index
    %c0_55 = arith.constant 0 : index
    %c0_56 = arith.constant 0 : index
    %45 = vector.load %arg4[%c0_54, %c0_55, %c0_56] : memref<1x8x256xf32, #tpu.memory_space<vmem>>, vector<1x8x256xf32>
    %46 = vector.shape_cast %45 : vector<1x8x256xf32> to vector<8x256xf32>
    %47 = vector.shape_cast %44 : vector<8x256xf32> to vector<1x8x256xf32>
    tpu.vector_store %arg4[%c0_54, %c0_55, %c0_56], %47 {strides = array<i32>} : memref<1x8x256xf32, #tpu.memory_space<vmem>>, vector<1x8x256xf32>,
    return
  }
  func.func @transform_0(%arg0: i32) -> (i32, i32, i32, i32) {
    %c0_i32 = arith.constant 0 : i32
    %c0_i32_0 = arith.constant 0 : i32
    %c0_i32_1 = arith.constant 0 : i32
    %c0_i32_2 = arith.constant 0 : i32
    return %arg0, %c0_i32, %c0_i32_0, %c0_i32_1 : i32, i32, i32, i32
  }
  func.func @transform_1(%arg0: i32) -> (i32, i32) {
    %c0_i32 = arith.constant 0 : i32
    %c0_i32_0 = arith.constant 0 : i32
    %c0_i32_1 = arith.constant 0 : i32
    return %c0_i32, %c0_i32_0 : i32, i32
  }
  func.func @transform_2(%arg0: i32) -> (i32, i32) {
    %c0_i32 = arith.constant 0 : i32
    %c0_i32_0 = arith.constant 0 : i32
    %c0_i32_1 = arith.constant 0 : i32
    return %c0_i32, %c0_i32_0 : i32, i32
  }
  func.func @transform_3(%arg0: i32) -> (i32, i32, i32) {
    %c0_i32 = arith.constant 0 : i32
    %c0_i32_0 = arith.constant 0 : i32
    %c0_i32_1 = arith.constant 0 : i32
    return %arg0, %c0_i32, %c0_i32_0 : i32, i32, i32
  }
}

</mosaic_0001>

<bundles_post_ra>
// kernel: tpu_custom_call.1
= control target key start
LH: loop header
LB: loop body
LE: loop exit
PB: predicated region body
PF: predicated region fallthrough
CT: control target
= control target key end

     0   :  { %8 = vsyncpa [#allocation5], 0  ;;  %s4694_s0 = inlined_call_operand.hbm [shape: f32[2,4,16,16], index: 0, kind: input, shape index: {}]   ;;  %s4695_s1 = inlined_call_operand.vmem [shape: f32[8,36], index: 1, kind: input, shape index: {}]   ;;  %s4696_s2 = inlined_call_operand.vmem [shape: f32[8,1], index: 2, kind: input, shape index: {}]   ;;  %s4697_s3 = inlined_call_operand.hbm [shape: f32[2,8,256], index: 3, kind: output, shape index: {}]  }
   0x1   :  { %10 = vsyncpa [#allocation5 + $0x1], 0 }
   0x2   :  { %11 = vsyncpa [#allocation6], 0 }
   0x3   :  { %13 = vsyncpa [#allocation6 + $0x1], 0  ;;  %s2978_s12 = smov 0   ;;  %s2980_s13 = smov 0  }
   0x4   :  { %s2982_s14 = smov 0   ;;  %s2984_s15 = smov 0  }
   0x5 LB: > { %s2999_s16 = sadd.s32 4294967295, %s2937_s15   ;;  %s2750_s17 = sadd.s32 4294967294, %s2937_s15   ;;  %s2937_s15 = sphi %s2984_s15, %s4750_s15   ;;  %s2933_s14 = sphi %s2982_s14, %s4749_s14   ;;  %s2929_s13 = sphi %s2980_s13, %s4748_s13   ;;  %s2925_s12 = sphi %s2978_s12, %s4747_s12  }
   0x6   : > { %s3003_s18 = sadd.s32 1, %s2937_s15   ;;  %s26_s19 = sadd.s32 1, %s2933_s14 }
   0x7   : > { %s23_s20 = ssub.s32 %s2937_s15, %s3003_s18  ;;  %p33_p0 = scmp.ne.s32.totalorder %s2933_s14, %s2929_s13 }
   0x8   : > { %p24_p1 = scmp.eq.s32.totalorder %s23_s20, 0  ;;  %p34_p2 = scmp.eq.s32.totalorder %s2937_s15, 0 }
   0x9   : > { %p39_p3 = scmp.ne.s32.totalorder %s2929_s13, %s2925_s12  ;;  %p40_p4 = scmp.eq.s32.totalorder %s2999_s16, 0 }
   0xa   : > { %s3015_s21 = scalar_select %p24_p1, %s2933_s14, %s26_s19  }
   0xb   : > { %p3017_p5 = por %p34_p2, %p33_p0  ;;  %p3021_p6 = por %p40_p4, %p39_p3 }
   0xc   : > { %p105_p7 = scmp.eq.s32.totalorder %s2999_s16, 1  ;;  %p111_p8 = scmp.eq.s32.totalorder %s2750_s17, 1 }
   0xd   : > { %p2789_p10 = scmp.lt.s32.totalorder %s2937_s15, 2  ;;  %s137_s26 = sand.u32 1, %s2933_s14  }
   0xe   : > { %p3028_p11 = por %p105_p7, %p33_p0  ;;  %p3032_p12 = por %p111_p8, %p39_p3 }
   0xf   : > { %s2767_s27 = sshll.u32 %s2937_s15, 10  ;;  %s2753_s28 = sshll.u32 %s137_s26, 6 }
  0x10   : > { %s4713_s24 = scalar_select %p3028_p11, 1, 0 }
  0x11   : > { %s4714_s25 = scalar_select %p3032_p12, 1, 0 }
  0x12   : > { %s3041_s4 = scalar_lea.hbm %s4694_s0, %s2767_s27  ;;  %s141_s5 = scalar_lea.vmem [#allocation4], %s2753_s28 }
  0x13   : > { %s148_s6 = sshll.u32 %s141_s5, 4  ;;  %p3045_p13 = pnand %p2789_p10, %p3017_p5  ;;  %s3049_s6 = int_to_ptr.vmem [resolvable:$true] %s148_s6 }
  0x14   : > { %s3051_s8 = scalar_lea.sflag [#allocation5], %s137_s26  ;;  %s2841_s9 = scalar_lea.hbm %s3041_s4, 1024 }
  0x15   : > { %p2842_p0 = scmp.ne.s32.totalorder %s3041_s4, %s2841_s9  ;;  %p2843_p1 = pneg %p3045_p13 }
  0x16   : > { %s2846_s17 = scalar_lea.hbm %s4694_s0, 2048  ;;  %p2847_p4 = scmp.lt.u32.totalorder %s3041_s4, %s4694_s0 }
  0x17   : > { %p2844_p2 = pnand %p2843_p1, %p2842_p0  ;;  %p2848_p5 = scmp.lt.u32.totalorder %s2846_s17, %s2841_s9 }
  0x18   : > { %p2850_p8 = scmp.lt.u32.totalorder %s2841_s9, %s3041_s4 }
  0x19   : > { %p2845_p3 = pneg %p2844_p2  ;;  %p2849_p7 = por %p2848_p5, %p2847_p4 }
  0x1b   : > { %p2851_p10 = por %p2850_p8, %p2849_p7 }
  0x1d   : > { %p2852_p9 = pnand %p2851_p10, %p2845_p3 }
  0x1f   : > { %2855 = shalt.err (!%p2852_p9)
}
  0x20   : > { %s2856_s22 = scalar_lea.vmem %s3049_s6, 1024  ;;  %s2939_s26 = smov [#allocation4]  }
  0x21   : > { %p2857_p0 = scmp.ne.s32.totalorder %s3049_s6, %s2856_s22  ;;  %s2861_s27 = sshll.u32 %s2939_s26, 4  ;;  %s2862_s27 = int_to_ptr.vmem [resolvable:$false] %s2861_s27 }
  0x22   : > { %s2863_s28 = scalar_lea.vmem %s2862_s27, 2048  ;;  %p2864_p11 = scmp.lt.s32.totalorder %s3049_s6, %s2862_s27 }
  0x23   : > { %p2859_p2 = pnand %p2857_p0, %p2843_p1  ;;  %p2865_p4 = scmp.lt.s32.totalorder %s2863_s28, %s2856_s22 }
  0x25   : > { %p2860_p12 = pneg %p2859_p2  ;;  %p2866_p5 = por %p2865_p4, %p2864_p11 }
  0x27   : > { %p2867_p7 = pnand %p2866_p5, %p2860_p12 }
  0x29   : > { %2870 = shalt.err (!%p2867_p7)
}
  0x2a   : > { %s2940_s29 = smov 128   ;;  %s2941_s30 = smov 8  }
  0x2b   : > { %2784 = dma.hbm_to_vmem [thread:$0]  (!%p3045_p13), %s3041_s4, 1024, %s3049_s6, %s3051_s8, %s2940_s29, %s2940_s29, %s2941_s30  }
  0x2c   : > { %p2756_p9 = scmp.ge.s32.totalorder %s2937_s15, 1  ;;  %p156_p1 = scmp.lt.s32.totalorder %s2937_s15, 3 }
  0x2e   : > { %p157_p3 = pnand %p2756_p9, %p156_p1 }
  0x30   : > { %160 = sbr.rel (%p157_p3) target bundleno = 1144 (0x478), region = 32 }
  0x37   : > { %s3082_s5 = sand.u32 1, %s2929_s13  }
  0x38   : > { %s2757_s9 = sshll.u32 %s3082_s5, 6  ;;  %s163_s10 = scalar_lea.sflag [#allocation5], %s3082_s5 }
  0x39   : > { %s3086_s11 = scalar_lea.vmem [#allocation4], %s2757_s9 }
  0x3a   : > { %2916 = dma.done.wait (%p3021_p6), %s163_s10, 1024  }
  0x3b   : > { %2918 = vsyncadd (%p3021_p6), %s163_s10, 4294966272  ;;  %v191_v0 = vld [vmem:[%s3086_s11 + $0x10] sm:$0xff]  ;;  %v189_v1 = vld [vmem:[%s3086_s11] sm:$0xff]  ;;  %s2942_s4 = smov 1   ;;  %vm229_vm0 = vcmask 138248   ;;  %s2943_s23 = smov 126  }
  0x3c   : > { %209 = vrot.lane.b32.xlu1 %v191_v0, %s2942_s4  ;;  %205 = vrot.lane.b32.xlu0 %v189_v1, %s2942_s4  ;;  %v192_v2 = vld [vmem:[%s3086_s11 + $0x18] sm:$0xff]  ;;  %v190_v3 = vld [vmem:[%s3086_s11 + $0x8] sm:$0xff]  ;;  %vm258_vm1 = vcmask 131080   ;;  %vm347_vm2 = vcmask 7168   ;;  %s2944_s6 = smov 2   ;;  %vm350_vm3 = vcmask 1024  }
  0x3d   : > { %v194_v4 = vld [vmem:[%s3086_s11 + $0x28] sm:$0xff]  ;;  %v193_v5 = vld [vmem:[%s3086_s11 + $0x20] sm:$0xff]  ;;  %v196_v6 = vld [vmem:[%s3086_s11 + $0x38] sm:$0xff]  ;;  %v4708_v60 = vmov 0.0   ;;  %vm421_vm4 = vcmask 146568   ;;  %s2947_s7 = smov 127  }
  0x3e   : > { %v195_v7 = vld [vmem:[%s3086_s11 + $0x30] sm:$0xff]  ;;  %v238_v9 = vld [vmem:[%s3086_s11 + $0x1] sm:$0x1]  ;;  %v264_v12 = vld [vmem:[%s3086_s11 + $0x1e] sm:$0x1]  ;;  %2656 = vmatprep.mubr.f32.mxu0 %v4708_v60  ;;  %vm424_vm5 = vcmask 140424  }
  0x3f   : > { %v239_v8 = vld [vmem:[%s3086_s11 + $0x11] sm:$0x1]  ;;  %v240_v11 = vld [vmem:[%s3086_s11 + $0x21] sm:$0x1]  ;;  %v263_v13 = vld [vmem:[%s3086_s11 + $0xe] sm:$0x1] }
  0x40   : > { %211 = vrot.lane.b32.xlu1 %v192_v2, %s2942_s4  ;;  %207 = vrot.lane.b32.xlu0 %v190_v3, %s2942_s4  ;;  %v241_v10 = vld [vmem:[%s3086_s11 + $0x31] sm:$0x1]  ;;  %v266_v14 = vld [vmem:[%s3086_s11 + $0x3e] sm:$0x1]  ;;  %vm1146_vm6 = vcmask 1046528   ;;  %vm1859_vm7 = vcmask 1045504  }
  0x41   : > { %v265_v15 = vld [vmem:[%s3086_s11 + $0x2e] sm:$0x1]  ;;  %s2949_s8 = smov 32   ;;  %s2950_s17 = smov 64   ;;  %vm641_vm8 = vcmask 130048   ;;  %vm643_vm9 = vcmask 261120  }
  0x42   : > { %s2951_s19 = smov 96   ;;  %s2952_s20 = smov 16   ;;  %vm645_vm10 = vcmask 392192   ;;  %vm647_vm11 = vcmask 523264   ;;  %vm649_vm12 = vcmask 654336   ;;  %vm651_vm13 = vcmask 785408  }
  0x43   : > { %s2953_s22 = smov 48   ;;  %s2954_s26 = smov 80   ;;  %vm653_vm14 = vcmask 916480   ;;  %vm2585_vm15 = vcmask 1043456  }
  0x44   : > { %215 = vrot.lane.b32.xlu1 %v194_v4, %s2942_s4  ;;  %213 = vrot.lane.b32.xlu0 %v193_v5, %s2942_s4  ;;  %s2955_s27 = smov 112   ;;  %s2758_s10 = sshll.u32 %s3082_s5, 4 }
  0x45   : > { %s2768_s11 = sshll.u32 %s2999_s16, 8  ;;  %p4744_p11 = scmp.ne.s32.totalorder %s4713_s24, 0 }
  0x48   : > { %219 = vrot.lane.b32.xlu1 %v196_v6, %s2942_s4  ;;  %217 = vrot.lane.b32.xlu0 %v195_v7, %s2942_s4 }
  0x4c   : > { %248 = vrot.lane.b32.xlu1 %v239_v8, %s2942_s4  ;;  %246 = vrot.lane.b32.xlu0 %v238_v9, %s2942_s4  ;;  %v2946_v8 = vmov 1983009808  }
  0x4d   : > { %v452_v9 = vunpack.c.l.s4 %v2946_v8 }
  0x50   : > { %252 = vrot.lane.b32.xlu1 %v241_v10, %s2942_s4  ;;  %250 = vrot.lane.b32.xlu0 %v240_v11, %s2942_s4  ;;  %v454_v10 = vlaneseq }
  0x54   : > { %273 = vrot.lane.b32.xlu1 %v264_v12, %s2942_s4  ;;  %271 = vrot.lane.b32.xlu0 %v263_v13, %s2942_s4 }
  0x58   : > { %277 = vrot.lane.b32.xlu1 %v266_v14, %s2942_s4  ;;  %275 = vrot.lane.b32.xlu0 %v265_v15, %s2942_s4  ;;  %v453_v14 = vunpack.c.0.s8 %v452_v9  ;;  %v3173_v15 = vshrl.u32 %v454_v10, 7  ;;  %s188_s4 = scalar_lea.vmem [#allocation7], %s2758_s10 }
  0xae   : > { %v210_v16 = vpop.permute.xlu1 %209  ;;  %v206_v17 = vpop.permute.xlu0 %205 }
  0xaf   : > { %232 = vst.msk [vmem:[#allocation2 + $0x19] sm:$0xff] %vm229_vm0, %v210_v16  ;;  %230 = vst.msk [vmem:[#allocation2 + $0x1] sm:$0xff] %vm229_vm0, %v206_v17 }
  0xb2   : > { %v212_v18 = vpop.permute.xlu1 %211  ;;  %v208_v19 = vpop.permute.xlu0 %207 }
  0xb3   : > { %233 = vst.msk [vmem:[#allocation2 + $0x21] sm:$0xff] %vm229_vm0, %v212_v18  ;;  %231 = vst.msk [vmem:[#allocation2 + $0x9] sm:$0xff] %vm229_vm0, %v208_v19 }
  0xb6   : > { %v216_v20 = vpop.permute.xlu1 %215  ;;  %v214_v21 = vpop.permute.xlu0 %213 }
  0xb7   : > { %235 = vst.msk [vmem:[#allocation2 + $0x39] sm:$0xff] %vm229_vm0, %v216_v20  ;;  %234 = vst.msk [vmem:[#allocation2 + $0x31] sm:$0xff] %vm229_vm0, %v214_v21  ;;  %v3185_v20 = vsub.s32 %v453_v14, %v3173_v15 }
  0xba   : > { %v220_v22 = vpop.permute.xlu1 %219  ;;  %v218_v23 = vpop.permute.xlu0 %217  ;;  %v291_v24 = vld [vmem:[#allocation2 + $0x20] sm:$0xff]  ;;  %v288_v25 = vld [vmem:[#allocation2 + $0x8] sm:$0xff] }
  0xbb   : > { %237 = vst.msk [vmem:[#allocation2 + $0x51] sm:$0xff] %vm229_vm0, %v220_v22  ;;  %236 = vst.msk [vmem:[#allocation2 + $0x49] sm:$0xff] %vm229_vm0, %v218_v23  ;;  %319 = vrot.lane.b32.xlu1 %v291_v24, %s2943_s23  ;;  %313 = vrot.lane.b32.xlu0 %v288_v25, %s2943_s23  ;;  %vm2581_vm0 = vcmask 293888  }
  0xbe   : > { %v249_v26 = vpop.permute.xlu1 %248  ;;  %v247_v27 = vpop.permute.xlu0 %246  ;;  %v294_v28 = vld [vmem:[#allocation2 + $0x38] sm:$0xff] }
  0xbf   : > { %260 = vst.msk [vmem:[#allocation2 + $0x18] sm:$0x1] %vm258_vm1, %v249_v26  ;;  %259 = vst.msk [vmem:[#allocation2] sm:$0x1] %vm258_vm1, %v247_v27  ;;  %325 = vrot.lane.b32.xlu0 %v294_v28, %s2943_s23 }
  0xc2   : > { %v253_v29 = vpop.permute.xlu1 %252  ;;  %v251_v30 = vpop.permute.xlu0 %250  ;;  %v297_v31 = vld [vmem:[#allocation2 + $0x50] sm:$0xff] }
  0xc3   : > { %262 = vst.msk [vmem:[#allocation2 + $0x48] sm:$0x1] %vm258_vm1, %v253_v29  ;;  %261 = vst.msk [vmem:[#allocation2 + $0x30] sm:$0x1] %vm258_vm1, %v251_v30  ;;  %331 = vrot.lane.b32.xlu1 %v297_v31, %s2943_s23 }
  0xc6   : > { %v274_v32 = vpop.permute.xlu1 %273  ;;  %v272_v33 = vpop.permute.xlu0 %271  ;;  %v287_v34 = vld [vmem:[#allocation2] sm:$0xff]  ;;  %v290_v37 = vld [vmem:[#allocation2 + $0x18] sm:$0xff] }
  0xc7   : > { %284 = vst.msk [vmem:[#allocation2 + $0x29] sm:$0x1] %vm258_vm1, %v274_v32  ;;  %283 = vst.msk [vmem:[#allocation2 + $0x11] sm:$0x1] %vm258_vm1, %v272_v33  ;;  %311 = vrot.lane.b32.xlu0 %v287_v34, %s2943_s23 }
  0xca   : > { %v278_v35 = vpop.permute.xlu1 %277  ;;  %v276_v36 = vpop.permute.xlu0 %275  ;;  %v293_v38 = vld [vmem:[#allocation2 + $0x30] sm:$0xff]  ;;  %v296_v40 = vld [vmem:[#allocation2 + $0x48] sm:$0xff] }
  0xcb   : > { %286 = vst.msk [vmem:[#allocation2 + $0x59] sm:$0x1] %vm258_vm1, %v278_v35  ;;  %285 = vst.msk [vmem:[#allocation2 + $0x41] sm:$0x1] %vm258_vm1, %v276_v36  ;;  %317 = vrot.lane.b32.xlu0 %v290_v37, %s2943_s23 }
  0xce   : > { %v289_v39 = vld [vmem:[#allocation2 + $0x10] sm:$0x3]  ;;  %v292_v41 = vld [vmem:[#allocation2 + $0x28] sm:$0x3] }
  0xcf   : > { %323 = vrot.lane.b32.xlu0 %v293_v38, %s2943_s23  ;;  %315 = vrot.lane.b32.xlu1 %v289_v39, %s2943_s23 }
  0xd2   : > { %v295_v42 = vld [vmem:[#allocation2 + $0x40] sm:$0x3]  ;;  %v298_v43 = vld [vmem:[#allocation2 + $0x58] sm:$0x3] }
  0xd3   : > { %329 = vrot.lane.b32.xlu0 %v296_v40, %s2943_s23  ;;  %321 = vrot.lane.b32.xlu1 %v292_v41, %s2943_s23 }
  0xd7   : > { %327 = vrot.lane.b32.xlu1 %v295_v42, %s2943_s23 }
  0xdb   : > { %333 = vrot.lane.b32.xlu1 %v298_v43, %s2943_s23 }
 0x12d   : > { %v320_v44 = vpop.permute.xlu1 %319  ;;  %v314_v45 = vpop.permute.xlu0 %313 }
 0x12e   : > { %353 = vst.msk [vmem:[#allocation2 + $0x20] sm:$0xff] %vm347_vm2, %v320_v44  ;;  %349 = vst.msk [vmem:[#allocation2 + $0x8] sm:$0xff] %vm347_vm2, %v314_v45 }
 0x131   : > { %v326_v46 = vpop.permute.xlu0 %325 }
 0x132   : > { %356 = vst.msk [vmem:[#allocation2 + $0x38] sm:$0xff] %vm347_vm2, %v326_v46 }
 0x135   : > { %v332_v47 = vpop.permute.xlu1 %331  ;;  %v365_v48 = vld [vmem:[#allocation2 + $0x20] sm:$0xff]  ;;  %v362_v49 = vld [vmem:[#allocation2 + $0x8] sm:$0xff] }
 0x136   : > { %359 = vst.msk [vmem:[#allocation2 + $0x50] sm:$0xff] %vm347_vm2, %v332_v47  ;;  %393 = vrot.lane.b32.xlu1 %v365_v48, %s2944_s6  ;;  %387 = vrot.lane.b32.xlu0 %v362_v49, %s2944_s6 }
 0x139   : > { %v312_v50 = vpop.permute.xlu0 %311  ;;  %v368_v51 = vld [vmem:[#allocation2 + $0x38] sm:$0xff] }
 0x13a   : > { %348 = vst.msk [vmem:[#allocation2] sm:$0xff] %vm347_vm2, %v312_v50  ;;  %399 = vrot.lane.b32.xlu0 %v368_v51, %s2944_s6 }
 0x13d   : > { %v318_v52 = vpop.permute.xlu0 %317  ;;  %v371_v53 = vld [vmem:[#allocation2 + $0x50] sm:$0xff] }
 0x13e   : > { %352 = vst.msk [vmem:[#allocation2 + $0x18] sm:$0xff] %vm347_vm2, %v318_v52  ;;  %405 = vrot.lane.b32.xlu1 %v371_v53, %s2944_s6 }
 0x141   : > { %v316_v54 = vpop.permute.xlu1 %315  ;;  %v324_v55 = vpop.permute.xlu0 %323  ;;  %v361_v56 = vld [vmem:[#allocation2] sm:$0xff] }
 0x142   : > { %351 = vst.msk [vmem:[#allocation2 + $0x10] sm:$0x3] %vm350_vm3, %v316_v54  ;;  %385 = vrot.lane.b32.xlu0 %v361_v56, %s2944_s6 }
 0x143   : > { %355 = vst.msk [vmem:[#allocation2 + $0x30] sm:$0xff] %vm347_vm2, %v324_v55 }
 0x145   : > { %v322_v57 = vpop.permute.xlu1 %321  ;;  %v330_v58 = vpop.permute.xlu0 %329  ;;  %v364_v59 = vld [vmem:[#allocation2 + $0x18] sm:$0xff] }
 0x146   : > { %354 = vst.msk [vmem:[#allocation2 + $0x28] sm:$0x3] %vm350_vm3, %v322_v57  ;;  %391 = vrot.lane.b32.xlu0 %v364_v59, %s2944_s6 }
 0x147   : > { %358 = vst.msk [vmem:[#allocation2 + $0x48] sm:$0xff] %vm347_vm2, %v330_v58 }
 0x149   : > { %v328_v61 = vpop.permute.xlu1 %327  ;;  %v363_v62 = vld [vmem:[#allocation2 + $0x10] sm:$0x3] }
 0x14a   : > { %v367_v63 = vld [vmem:[#allocation2 + $0x30] sm:$0xff]  ;;  %357 = vst.msk [vmem:[#allocation2 + $0x40] sm:$0x3] %vm350_vm3, %v328_v61  ;;  %389 = vrot.lane.b32.xlu1 %v363_v62, %s2944_s6 }
 0x14b   : > { %397 = vrot.lane.b32.xlu0 %v367_v63, %s2944_s6 }
 0x14d   : > { %v334_v0 = vpop.permute.xlu1 %333  ;;  %v366_v1 = vld [vmem:[#allocation2 + $0x28] sm:$0x3] }
 0x14e   : > { %v370_v2 = vld [vmem:[#allocation2 + $0x48] sm:$0xff]  ;;  %360 = vst.msk [vmem:[#allocation2 + $0x58] sm:$0x3] %vm350_vm3, %v334_v0  ;;  %395 = vrot.lane.b32.xlu1 %v366_v1, %s2944_s6 }
 0x14f   : > { %403 = vrot.lane.b32.xlu0 %v370_v2, %s2944_s6 }
 0x151   : > { %v369_v3 = vld [vmem:[#allocation2 + $0x40] sm:$0x3] }
 0x152   : > { %401 = vrot.lane.b32.xlu1 %v369_v3, %s2944_s6 }
 0x155   : > { %v372_v4 = vld [vmem:[#allocation2 + $0x58] sm:$0x3] }
 0x156   : > { %407 = vrot.lane.b32.xlu1 %v372_v4, %s2944_s6 }
 0x1a8   : > { %v394_v5 = vpop.permute.xlu1 %393  ;;  %v388_v6 = vpop.permute.xlu0 %387 }
 0x1a9   : > { %427 = vst.msk [vmem:[#allocation2 + $0x20] sm:$0xff] %vm421_vm4, %v394_v5  ;;  %423 = vst.msk [vmem:[#allocation2 + $0x8] sm:$0xff] %vm421_vm4, %v388_v6 }
 0x1ac   : > { %v400_v7 = vpop.permute.xlu0 %399 }
 0x1ad   : > { %430 = vst.msk [vmem:[#allocation2 + $0x38] sm:$0xff] %vm421_vm4, %v400_v7 }
 0x1b0   : > { %v406_v11 = vpop.permute.xlu1 %405  ;;  %v3164_v12 = vld [vmem:[#allocation2 + $0x20] sm:$0xff]  ;;  %v3166_v13 = vld [vmem:[#allocation2 + $0x8] sm:$0xff] }
 0x1b1   : > { %433 = vst.msk [vmem:[#allocation2 + $0x50] sm:$0xff] %vm421_vm4, %v406_v11  ;;  %678 = vrot.lane.b32.xlu1 %v3164_v12, %s2947_s7  ;;  %674 = vrot.lane.b32.xlu0 %v3166_v13, %s2947_s7  ;;  %v1148_v42 = vrot.slane %v3166_v13, 1  ;;  %v1153_v56 = vrot.slane %v3164_v12, 1  ;;  %v1861_v62 = vrot.slane %v3166_v13, 2  ;;  %v1866_v63 = vrot.slane %v3164_v12, 2 }
 0x1b4   : > { %v386_v16 = vpop.permute.xlu0 %385  ;;  %v3175_v17 = vld [vmem:[#allocation2 + $0x38] sm:$0xff] }
 0x1b5   : > { %422 = vst.msk [vmem:[#allocation2] sm:$0xff] %vm421_vm4, %v386_v16  ;;  %682 = vrot.lane.b32.xlu0 %v3175_v17, %s2947_s7  ;;  %v517_v18 = vcombine.low %v3166_v13, %v3175_v17  ;;  %v518_v19 = vcombine.high %v3166_v13, %v3175_v17  ;;  %v1158_v43 = vrot.slane %v3175_v17, 1  ;;  %v1871_v3 = vrot.slane %v3175_v17, 2 }
 0x1b7   : > { %v3197_v25 = vrot.slane %v517_v18, %v3185_v20  ;;  %v3203_v27 = vrot.slane %v518_v19, %v3185_v20 }
 0x1b8   : > { %v392_v21 = vpop.permute.xlu0 %391  ;;  %v3187_v22 = vld [vmem:[#allocation2 + $0x50] sm:$0xff] }
 0x1b9   : > { %426 = vst.msk [vmem:[#allocation2 + $0x18] sm:$0xff] %vm421_vm4, %v392_v21  ;;  %686 = vrot.lane.b32.xlu1 %v3187_v22, %s2947_s7  ;;  %v533_v23 = vcombine.low %v3164_v12, %v3187_v22  ;;  %v534_v24 = vcombine.high %v3164_v12, %v3187_v22  ;;  %v1163_v57 = vrot.slane %v3187_v22, 1  ;;  %v1876_v4 = vrot.slane %v3187_v22, 2 }
 0x1bb   : > { %v3200_v26 = vrot.slane %v533_v23, %v3185_v20  ;;  %v3206_v28 = vrot.slane %v534_v24, %v3185_v20 }
 0x1bc   : > { %v390_v29 = vpop.permute.xlu1 %389  ;;  %v3208_v31 = vld [vmem:[#allocation2] sm:$0xff] }
 0x1bd   : > { %v398_v30 = vpop.permute.xlu0 %397  ;;  %425 = vst.msk [vmem:[#allocation2 + $0x10] sm:$0x3] %vm424_vm5, %v390_v29  ;;  %672 = vrot.lane.b32.xlu0 %v3208_v31, %s2947_s7  ;;  %v550_v32 = vcombine.high %v3197_v25, %v3200_v26  ;;  %v565_v33 = vcombine.low %v3203_v27, %v3206_v28  ;;  %v566_v34 = vcombine.high %v3203_v27, %v3206_v28  ;;  %v1147_v39 = vrot.slane %v3208_v31, 1 }
 0x1be   : > { %429 = vst.msk [vmem:[#allocation2 + $0x30] sm:$0xff] %vm421_vm4, %v398_v30  ;;  %v549_v35 = vcombine.low %v3197_v25, %v3200_v26 }
 0x1bf   : > { %v3242_v48 = vsel %vm1146_vm6, %v1147_v39, %v1148_v42 }
 0x1c0   : > { %v396_v36 = vpop.permute.xlu1 %395  ;;  %v3222_v38 = vld [vmem:[#allocation2 + $0x18] sm:$0xff] }
 0x1c1   : > { %v404_v37 = vpop.permute.xlu0 %403  ;;  %428 = vst.msk [vmem:[#allocation2 + $0x28] sm:$0x3] %vm424_vm5, %v396_v36  ;;  %676 = vrot.lane.b32.xlu1 %v3222_v38, %s2947_s7  ;;  %v1152_v50 = vrot.slane %v3222_v38, 1 }
 0x1c2   : > { %432 = vst.msk [vmem:[#allocation2 + $0x48] sm:$0xff] %vm421_vm4, %v404_v37 }
 0x1c3   : > { %v3265_v0 = vsel %vm1146_vm6, %v1152_v50, %v1153_v56 }
 0x1c4   : > { %v402_v40 = vpop.permute.xlu1 %401  ;;  %v439_v45 = vld [vmem:[#allocation2 + $0x10] sm:$0x3] }
 0x1c5   : > { %v3229_v41 = vld [vmem:[#allocation2 + $0x30] sm:$0xff]  ;;  %431 = vst.msk [vmem:[#allocation2 + $0x40] sm:$0x3] %vm424_vm5, %v402_v40  ;;  %v1150_v55 = vrot.slane %v439_v45, 1  ;;  %v1863_v59 = vrot.slane %v439_v45, 2 }
 0x1c6   : > { %680 = vrot.lane.b32.xlu0 %v3229_v41, %s2947_s7  ;;  %v1157_v44 = vrot.slane %v3229_v41, 1  ;;  %v449_v46 = vcombine.low %v3208_v31, %v3229_v41  ;;  %v450_v47 = vcombine.high %v3208_v31, %v3229_v41 }
 0x1c7   : > { %v3281_v7 = vsel %vm1146_vm6, %v1148_v42, %v1150_v55  ;;  %v3288_v14 = vsel %vm1859_vm7, %v1861_v62, %v1863_v59 }
 0x1c8   : > { %v3245_v49 = vsel %vm1146_vm6, %v1157_v44, %v1158_v43  ;;  %v408_v51 = vpop.permute.xlu1 %407  ;;  %v442_v61 = vld [vmem:[#allocation2 + $0x28] sm:$0x3]  ;;  %v3302_v23 = vrot.slane %v449_v46, %v3185_v20 }
 0x1c9   : > { %v3248_v52 = vld [vmem:[#allocation2 + $0x48] sm:$0xff]  ;;  %v1175_v53 = vcombine.low %v3242_v48, %v3245_v49  ;;  %v1176_v54 = vcombine.high %v3242_v48, %v3245_v49  ;;  %434 = vst.msk [vmem:[#allocation2 + $0x58] sm:$0x3] %vm424_vm5, %v408_v51  ;;  %v1155_v11 = vrot.slane %v442_v61, 1  ;;  %v1868_v16 = vrot.slane %v442_v61, 2 }
 0x1ca   : > { %912 = vrot.lane.b32.xlu0 %v3166_v13, %s2943_s23  ;;  %684 = vrot.lane.b32.xlu1 %v3248_v52, %s2947_s7  ;;  %v1162_v58 = vrot.slane %v3248_v52, 1  ;;  %v465_v10 = vcombine.low %v3222_v38, %v3248_v52  ;;  %v466_v44 = vcombine.high %v3222_v38, %v3248_v52 }
 0x1cb   : > { %v3291_v18 = vrot.slane %v1175_v53, %v3185_v20  ;;  %v3324_v45 = vsel %vm1146_vm6, %v1153_v56, %v1155_v11  ;;  %v3329_v46 = vsel %vm1859_vm7, %v1866_v63, %v1868_v16  ;;  %v3344_v56 = vrot.slane %v450_v47, %v3185_v20 }
 0x1cc   : > { %v3268_v1 = vsel %vm1146_vm6, %v1162_v58, %v1163_v57  ;;  %v445_v2 = vld [vmem:[#allocation2 + $0x40] sm:$0x3]  ;;  %v3305_v24 = vrot.slane %v465_v10, %v3185_v20  ;;  %v3347_v58 = vrot.slane %v466_v44, %v3185_v20  ;;  %v3360_v47 = vrot.slane %v1176_v54, %v3185_v20 }
 0x1cd   : > { %v1191_v5 = vcombine.low %v3265_v0, %v3268_v1  ;;  %v1192_v6 = vcombine.high %v3265_v0, %v3268_v1  ;;  %v1160_v8 = vrot.slane %v445_v2, 1  ;;  %v1873_v9 = vrot.slane %v445_v2, 2 }
 0x1ce   : > { %920 = vrot.lane.b32.xlu0 %v3175_v17, %s2943_s23  ;;  %916 = vrot.lane.b32.xlu1 %v3164_v12, %s2943_s23  ;;  %v2948_v12 = vmov 1934713408  }
 0x1cf   : > { %v3294_v19 = vsel %vm1146_vm6, %v1158_v43, %v1160_v8  ;;  %v3299_v21 = vsel %vm1859_vm7, %v1871_v3, %v1873_v9  ;;  %v482_v43 = vcombine.high %v3302_v23, %v3305_v24  ;;  %v3332_v50 = vrot.slane %v1191_v5, %v3185_v20 }
 0x1d0   : > { %v1243_v29 = vcombine.low %v3281_v7, %v3294_v19  ;;  %v1244_v30 = vcombine.high %v3281_v7, %v3294_v19  ;;  %v448_v36 = vld [vmem:[#allocation2 + $0x58] sm:$0x3]  ;;  %v1956_v37 = vcombine.low %v3288_v14, %v3299_v21  ;;  %v1957_v39 = vcombine.high %v3288_v14, %v3299_v21 }
 0x1d1   : > { %v1165_v40 = vrot.slane %v448_v36, 1  ;;  %v1878_v42 = vrot.slane %v448_v36, 2  ;;  %v3335_v51 = vrot.slane %v1192_v6, %v3185_v20  ;;  %v497_v5 = vcombine.low %v3344_v56, %v3347_v58 }
 0x1d2   : > { %910 = vrot.lane.b32.xlu0 %v3208_v31, %s2943_s23  ;;  %924 = vrot.lane.b32.xlu1 %v3187_v22, %s2943_s23  ;;  %v498_v6 = vcombine.high %v3344_v56, %v3347_v58  ;;  %v3367_v8 = vrot.slane %v1243_v29, %v3185_v20  ;;  %v3370_v9 = vrot.slane %v1244_v30, %v3185_v20  ;;  %v484_v22 = vunpack.c.l.s4 %v2948_v12 }
 0x1d3   : > { %v1166_v53 = vsel %vm1146_vm6, %v1163_v57, %v1165_v40  ;;  %v3341_v55 = vsel %vm1859_vm7, %v1876_v4, %v1878_v42  ;;  %v481_v36 = vcombine.low %v3302_v23, %v3305_v24  ;;  %v1208_v29 = vcombine.high %v3291_v18, %v3332_v50 }
 0x1d4   : > { %v1259_v59 = vcombine.low %v3324_v45, %v1166_v53  ;;  %v1260_v61 = vcombine.high %v3324_v45, %v1166_v53  ;;  %v1972_v2 = vcombine.low %v3329_v46, %v3341_v55  ;;  %v1973_v57 = vcombine.high %v3329_v46, %v3341_v55 }
 0x1d5   : > { %v1865_v42 = vrot.slane %v3222_v38, 2 }
 0x1d6   : > { %918 = vrot.lane.b32.xlu0 %v3229_v41, %s2943_s23  ;;  %914 = vrot.lane.b32.xlu1 %v3222_v38, %s2943_s23  ;;  %v3373_v10 = vrot.slane %v1259_v59, %v3185_v20  ;;  %v3376_v11 = vrot.slane %v1260_v61, %v3185_v20  ;;  %v3379_v54 = vrot.slane %v1972_v2, %v3185_v20  ;;  %v485_v38 = vunpack.c.0.s8 %v484_v22 }
 0x1d7   : > { %v3382_v16 = vrot.slane %v1973_v57, %v3185_v20  ;;  %v3401_v59 = vrot.slane %v1956_v37, %v3185_v20  ;;  %v3404_v61 = vrot.slane %v1957_v39, %v3185_v20  ;;  %v1860_v39 = vrot.slane %v3208_v31, 2 }
 0x1d8   : > { %v1276_v30 = vcombine.high %v3367_v8, %v3373_v10  ;;  %v1291_v40 = vcombine.low %v3370_v9, %v3376_v11  ;;  %v1870_v37 = vrot.slane %v3229_v41, 2  ;;  %v3459_v13 = vsel %vm1859_vm7, %v1865_v42, %v1866_v63 }
 0x1d9   : > { %v1989_v2 = vcombine.high %v3401_v59, %v3379_v54  ;;  %v2004_v44 = vcombine.low %v3404_v61, %v3382_v16  ;;  %v3443_v57 = vsel %vm1859_vm7, %v1860_v39, %v1861_v62  ;;  %v1875_v41 = vrot.slane %v3248_v52, 2 }
 0x1da   : > { %1623 = vrot.lane.b32.xlu0 %v3281_v7, %s2943_s23  ;;  %922 = vrot.lane.b32.xlu1 %v3248_v52, %s2943_s23  ;;  %v3454_v31 = vsel %vm1859_vm7, %v1870_v37, %v1871_v3 }
 0x1db   : > { %v3469_v17 = vsel %vm1859_vm7, %v1875_v41, %v1876_v4  ;;  %v1889_v42 = vcombine.high %v3443_v57, %v3454_v31 }
 0x1dc   : > { %v1904_v24 = vcombine.low %v3459_v13, %v3469_v17  ;;  %v1905_v56 = vcombine.high %v3459_v13, %v3469_v17 }
 0x1de   : > { %1631 = vrot.lane.b32.xlu0 %v3294_v19, %s2943_s23  ;;  %1627 = vrot.lane.b32.xlu1 %v3324_v45, %s2943_s23  ;;  %v3603_v58 = vrot.slane %v1904_v24, %v3185_v20  ;;  %v1919_v39 = vrot.slane %v1905_v56, %v3185_v20 }
 0x1e2   : > { %2098 = vrot.lane.b32.xlu0 %v3288_v14, %s2947_s7  ;;  %1635 = vrot.lane.b32.xlu1 %v1166_v53, %s2943_s23 }
 0x1e6   : > { %2106 = vrot.lane.b32.xlu0 %v3299_v21, %s2947_s7  ;;  %2102 = vrot.lane.b32.xlu1 %v3329_v46, %s2947_s7 }
 0x1ea   : > { %1621 = vrot.lane.b32.xlu0 %v3242_v48, %s2943_s23  ;;  %2110 = vrot.lane.b32.xlu1 %v3341_v55, %s2947_s7 }
 0x1ee   : > { %1629 = vrot.lane.b32.xlu0 %v3245_v49, %s2943_s23  ;;  %1625 = vrot.lane.b32.xlu1 %v3265_v0, %s2943_s23 }
 0x1f2   : > { %2096 = vrot.lane.b32.xlu0 %v3443_v57, %s2947_s7  ;;  %1633 = vrot.lane.b32.xlu1 %v3268_v1, %s2943_s23 }
 0x1f6   : > { %2104 = vrot.lane.b32.xlu0 %v3454_v31, %s2947_s7  ;;  %2100 = vrot.lane.b32.xlu1 %v3459_v13, %s2947_s7 }
 0x1fa   : > { %1391 = vrot.lane.b32.xlu0 %v3281_v7, %s2947_s7  ;;  %2108 = vrot.lane.b32.xlu1 %v3469_v17, %s2947_s7 }
 0x1fe   : > { %1399 = vrot.lane.b32.xlu0 %v3294_v19, %s2947_s7  ;;  %1395 = vrot.lane.b32.xlu1 %v3324_v45, %s2947_s7 }
 0x202   : > { %1389 = vrot.lane.b32.xlu0 %v3242_v48, %s2947_s7  ;;  %1403 = vrot.lane.b32.xlu1 %v1166_v53, %s2947_s7  ;;  %v3503_v48 = vsub.s32 %v485_v38, %v3173_v15 }
 0x204   : > { %v564_v52 = vrot.slane %v550_v32, %v3503_v48  ;;  %v505_v15 = vrot.slane %v497_v5, %v3503_v48  ;;  %v573_v62 = vrot.slane %v565_v33, %v3503_v48  ;;  %v512_v32 = vrot.slane %v498_v6, %v3503_v48 }
 0x205   : > { %v3534_v63 = vrot.slane %v549_v35, %v3503_v48  ;;  %v580_v33 = vrot.slane %v566_v34, %v3503_v48  ;;  %v3548_v25 = vrot.slane %v481_v36, %v3503_v48  ;;  %v1290_v23 = vrot.slane %v1276_v30, %v3503_v48 }
 0x206   : > { %1397 = vrot.lane.b32.xlu0 %v3245_v49, %s2947_s7  ;;  %1393 = vrot.lane.b32.xlu1 %v3265_v0, %s2947_s7  ;;  %v496_v49 = vrot.slane %v482_v43, %v3503_v48  ;;  %v582_v26 = vcombine.high %v564_v52, %v4708_v60  ;;  %v583_v35 = vcombine.high %v573_v62, %v4708_v60 }
 0x207   : > { %v581_v0 = vcombine.high %v3534_v63, %v4708_v60  ;;  %v513_v27 = vcombine.high %v3548_v25, %v4708_v60  ;;  %v584_v4 = vcombine.high %v580_v33, %v4708_v60  ;;  %v1222_v53 = vrot.slane %v1208_v29, %v3503_v48 }
 0x208   : > { %v514_v34 = vcombine.high %v496_v49, %v4708_v60  ;;  %v4716_v36 = vcombine.high %v3370_v9, %v3376_v11  ;;  %v4717_v30 = vcombine.low %v3360_v47, %v3335_v51  ;;  %v2003_v11 = vrot.slane %v1989_v2, %v3503_v48 }
 0x209   : > { %v2012_v2 = vrot.slane %v2004_v44, %v3503_v48 }
 0x20a   : > { %2336 = vrot.lane.b32.xlu0 %v3288_v14, %s2943_s23  ;;  %1401 = vrot.lane.b32.xlu1 %v3268_v1, %s2947_s7  ;;  %v515_v1 = vcombine.high %v505_v15, %v4708_v60  ;;  %v516_v14 = vcombine.high %v512_v32, %v4708_v60  ;;  %v1306_v29 = vrot.slane %v4716_v36, %v3503_v48 }
 0x20b   : > { %v1240_v36 = vcombine.high %v1222_v53, %v4708_v60 }
 0x20e   : > { %2344 = vrot.lane.b32.xlu0 %v3299_v21, %s2943_s23  ;;  %2340 = vrot.lane.b32.xlu1 %v3329_v46, %s2943_s23  ;;  %v1299_v46 = vrot.slane %v1291_v40, %v3503_v48  ;;  %v1231_v40 = vrot.slane %v4717_v30, %v3503_v48 }
 0x212   : > { %2334 = vrot.lane.b32.xlu0 %v3443_v57, %s2943_s23  ;;  %2348 = vrot.lane.b32.xlu1 %v3341_v55, %s2943_s23  ;;  %v1888_v55 = vcombine.low %v3443_v57, %v3454_v31  ;;  %v4718_v57 = vcombine.high %v3360_v47, %v3335_v51  ;;  %v4719_v47 = vcombine.low %v3367_v8, %v3373_v10 }
 0x214   : > { %v1896_v37 = vrot.slane %v1888_v55, %v3185_v20  ;;  %v3652_v38 = vrot.slane %v4719_v47, %v3503_v48 }
 0x216   : > { %2342 = vrot.lane.b32.xlu0 %v3454_v31, %s2943_s23  ;;  %2338 = vrot.lane.b32.xlu1 %v3459_v13, %s2943_s23  ;;  %v1238_v31 = vrot.slane %v4718_v57, %v3503_v48  ;;  %v1921_v41 = vcombine.high %v1896_v37, %v3603_v58  ;;  %v1307_v44 = vcombine.high %v3652_v38, %v4708_v60 }
 0x217   : > { %v2021_v57 = vcombine.high %v2003_v11, %v4708_v60 }
 0x218   : > { %v1935_v51 = vrot.slane %v1921_v41, %v3503_v48  ;;  %v1242_v30 = vcombine.high %v1238_v31, %v4708_v60 }
 0x21a   : > { %2346 = vrot.lane.b32.xlu1 %v3469_v17, %s2943_s23  ;;  %590 = vrot.lane.b32.xlu0 %v496_v49, %s2949_s8  ;;  %v1903_v17 = vrot.slane %v1889_v42, %v3185_v20  ;;  %v1241_v42 = vcombine.high %v1231_v40, %v4708_v60  ;;  %s2680_s23 = sshll.u32 %s188_s4, 4  ;;  %s4652_s23 = int_to_ptr.vmem [resolvable:$true] %s2680_s23 }
 0x21b   : > { %s2871_s16 = scalar_lea.vmem %s4652_s23, 256 }
 0x21c   : > { %v1936_v49 = vcombine.low %v1903_v17, %v1919_v39  ;;  %p2872_p6 = scmp.ne.s32.totalorder %s4652_s23, %s2871_s16 }
 0x21e   : > { %618 = vrot.lane.b32.xlu1 %v564_v52, %s2949_s8  ;;  %598 = vrot.lane.b32.xlu0 %v505_v15, %s2950_s17  ;;  %p2873_p12 = pnand %p2872_p6, %p4744_p11 }
 0x220   : > { %p2874_p13 = pneg %p2873_p12 }
 0x222   : > { %626 = vrot.lane.b32.xlu1 %v573_v62, %s2950_s17  ;;  %606 = vrot.lane.b32.xlu0 %v512_v32, %s2951_s19  ;;  %v3663_v62 = vrot.slane %v1936_v49, %v3503_v48  ;;  %v1308_v32 = vcombine.high %v1290_v23, %v4708_v60 }
 0x223   : > { %v3555_v28 = vpop.permute.xlu0 %674  ;;  %v3564_v3 = vpop.permute.xlu1 %678 }
 0x226   : > { %634 = vrot.lane.b32.xlu1 %v580_v33, %s2951_s19  ;;  %614 = vrot.lane.b32.xlu0 %v581_v0, %s2952_s20  ;;  %v4720_v33 = vcombine.high %v3404_v61, %v3382_v16  ;;  %v4721_v16 = vcombine.low %v3291_v18, %v3332_v50 }
 0x227   : > { %v3567_v7 = vpop.permute.xlu0 %682 }
 0x228   : > { %v3677_v0 = vrot.slane %v4720_v33, %v3503_v48  ;;  %v3692_v61 = vrot.slane %v4721_v16, %v3503_v48  ;;  %v764_v33 = vcombine.low %v3555_v28, %v3567_v7 }
 0x22a   : > { %622 = vrot.lane.b32.xlu1 %v582_v26, %s2953_s22  ;;  %586 = vrot.lane.b32.xlu0 %v513_v27, %s2952_s20  ;;  %v1937_v26 = vcombine.high %v1903_v17, %v1919_v39  ;;  %4722 = vst [vmem:[#allocation10_spill] sm:$0xff] %v3692_v61  ;;  %v1239_v24 = vcombine.high %v3692_v61, %v4708_v60 }
 0x22b   : > { %v3572_v19 = vpop.permute.xlu1 %686 }
 0x22c   : > { %v780_v41 = vcombine.low %v3564_v3, %v3572_v19 }
 0x22e   : > { %630 = vrot.lane.b32.xlu1 %v583_v35, %s2954_s26  ;;  %594 = vrot.lane.b32.xlu0 %v514_v34, %s2953_s22  ;;  %v1309_v35 = vcombine.high %v1299_v46, %v4708_v60  ;;  %v3764_v16 = vrot.slane %v780_v41, %v3185_v20 }
 0x22f   : > { %v3574_v21 = vpop.permute.xlu0 %672 }
 0x232   : > { %638 = vrot.lane.b32.xlu1 %v584_v4, %s2955_s27  ;;  %602 = vrot.lane.b32.xlu0 %v515_v1, %s2954_s26  ;;  %v1951_v1 = vrot.slane %v1937_v26, %v3503_v48 }
 0x233   : > { %v3584_v43 = vpop.permute.xlu1 %676 }
 0x236   : > { %1344 = vrot.lane.b32.xlu1 %v1290_v23, %s2949_s8  ;;  %610 = vrot.lane.b32.xlu0 %v516_v14, %s2955_s27  ;;  %v1310_v23 = vcombine.high %v1306_v29, %v4708_v60 }
 0x238   : > { %v3586_v45 = vpop.permute.xlu0 %680 }
 0x23a   : > { %1352 = vrot.lane.b32.xlu1 %v1299_v46, %s2950_s17  ;;  %1316 = vrot.lane.b32.xlu0 %v1222_v53, %s2949_s8  ;;  %v4723_v46 = vcombine.low %v3401_v59, %v3379_v54 }
 0x23c   : > { %v3605_v5 = vpop.permute.xlu1 %684  ;;  %v3607_v6 = vpop.permute.xlu0 %912  ;;  %v3707_v18 = vrot.slane %v4723_v46, %v3503_v48 }
 0x23d   : > { %v713_v53 = vcombine.high %v3584_v43, %v3605_v5 }
 0x23e   : > { %1360 = vrot.lane.b32.xlu1 %v1306_v29, %s2951_s19  ;;  %1324 = vrot.lane.b32.xlu0 %v1231_v40, %s2950_s17  ;;  %4724 = vst [vmem:[#allocation11_spill] sm:$0xff] %v3707_v18  ;;  %v2020_v56 = vcombine.high %v3707_v18, %v4708_v60  ;;  %v1920_v29 = vcombine.low %v1896_v37, %v3603_v58 }
 0x23f   : > { %v697_v40 = vcombine.high %v3574_v21, %v3586_v45  ;;  %v727_v17 = vrot.slane %v713_v53, %v3185_v20 }
 0x240   : > { %v3623_v13 = vpop.permute.xlu1 %916  ;;  %v3625_v9 = vpop.permute.xlu0 %920  ;;  %v3728_v39 = vrot.slane %v1920_v29, %v3503_v48  ;;  %v3779_v29 = vrot.slane %v764_v33, %v3185_v20 }
 0x241   : > { %v711_v26 = vrot.slane %v697_v40, %v3185_v20  ;;  %v1003_v33 = vcombine.high %v3607_v6, %v3625_v9 }
 0x242   : > { %2057 = vrot.lane.b32.xlu1 %v2003_v11, %s2949_s8  ;;  %1332 = vrot.lane.b32.xlu0 %v1238_v31, %s2951_s19  ;;  %4725 = vst [vmem:[#allocation12_spill] sm:$0xff] %v3728_v39  ;;  %v1952_v31 = vcombine.high %v3728_v39, %v4708_v60 }
 0x243   : > { %v745_v40 = vcombine.high %v711_v26, %v727_v17 }
 0x244   : > { %v3639_v12 = vpop.permute.xlu1 %924  ;;  %v3641_v22 = vpop.permute.xlu0 %910 }
 0x246   : > { %2065 = vrot.lane.b32.xlu1 %v2012_v2, %s2950_s17  ;;  %2029 = vrot.lane.b32.xlu0 %v1935_v51, %s2949_s8 }
 0x248   : > { %v3656_v52 = vpop.permute.xlu1 %914  ;;  %v3658_v15 = vpop.permute.xlu0 %918 }
 0x24a   : > { %1340 = vrot.lane.b32.xlu1 %v1307_v44, %s2952_s20  ;;  %2037 = vrot.lane.b32.xlu0 %v3663_v62, %s2950_s17  ;;  %v2022_v44 = vcombine.high %v2012_v2, %v4708_v60  ;;  %v712_v2 = vcombine.low %v3584_v43, %v3605_v5  ;;  %v781_v5 = vcombine.high %v3564_v3, %v3572_v19 }
 0x24b   : > { %v765_v19 = vcombine.high %v3555_v28, %v3567_v7  ;;  %v1018_v28 = vcombine.low %v3623_v13, %v3639_v12  ;;  %v1019_v7 = vcombine.high %v3623_v13, %v3639_v12 }
 0x24c   : > { %v3668_v8 = vpop.permute.xlu1 %922  ;;  %v3670_v10 = vpop.permute.xlu0 %1623 }
 0x24d   : > { %v950_v47 = vcombine.low %v3656_v52, %v3668_v8 }
 0x24e   : > { %1348 = vrot.lane.b32.xlu1 %v1308_v32, %s2953_s22  ;;  %2073 = vrot.lane.b32.xlu0 %v3677_v0, %s2951_s19  ;;  %v1953_v32 = vcombine.high %v1935_v51, %v4708_v60 }
 0x24f   : > { %v3769_v51 = vrot.slane %v950_v47, %v3185_v20 }
 0x250   : > { %v3682_v27 = vpop.permute.xlu1 %1627  ;;  %v3684_v34 = vpop.permute.xlu0 %1631 }
 0x252   : > { %1356 = vrot.lane.b32.xlu1 %v1309_v35, %s2954_s26  ;;  %2045 = vrot.lane.b32.xlu0 %v1951_v1, %s2951_s19  ;;  %v934_v35 = vcombine.low %v3641_v22, %v3658_v15 }
 0x254   : > { %v3696_v4 = vpop.permute.xlu1 %1635  ;;  %v3698_v14 = vpop.permute.xlu0 %2098  ;;  %v3784_v43 = vrot.slane %v934_v35, %v3185_v20  ;;  %v1026_v35 = vrot.slane %v1018_v28, %v3185_v20 }
 0x256   : > { %1364 = vrot.lane.b32.xlu1 %v1310_v23, %s2955_s27  ;;  %1312 = vrot.lane.b32.xlu0 %v1239_v24, %s2952_s20  ;;  %v744_v23 = vcombine.low %v711_v26, %v727_v17  ;;  %v779_v17 = vrot.slane %v765_v19, %v3185_v20 }
 0x258   : > { %v3711_v50 = vpop.permute.xlu1 %2102  ;;  %v3713_v55 = vpop.permute.xlu0 %2106  ;;  %v3806_v3 = vrot.slane %v744_v23, %v3503_v48 }
 0x259   : > { %v2188_v18 = vcombine.low %v3698_v14, %v3713_v55 }
 0x25a   : > { %2053 = vrot.lane.b32.xlu1 %v2020_v56, %s2952_s20  ;;  %1320 = vrot.lane.b32.xlu0 %v1240_v36, %s2953_s22  ;;  %v1954_v56 = vcombine.high %v3663_v62, %v4708_v60  ;;  %v1955_v36 = vcombine.high %v1951_v1, %v4708_v60  ;;  %v797_v62 = vcombine.high %v3779_v29, %v3764_v16 }
 0x25b   : > { %v3793_v1 = vrot.slane %v712_v2, %v3185_v20  ;;  %v1033_v2 = vrot.slane %v1019_v7, %v3185_v20 }
 0x25c   : > { %v3721_v54 = vpop.permute.xlu1 %2110  ;;  %v3723_v59 = vpop.permute.xlu0 %1621  ;;  %v3822_v41 = vrot.slane %v797_v62, %v3503_v48 }
 0x25e   : > { %1336 = vrot.lane.b32.xlu1 %v1242_v30, %s2955_s27  ;;  %1328 = vrot.lane.b32.xlu0 %v1241_v42, %s2954_s26  ;;  %v696_v30 = vcombine.low %v3574_v21, %v3586_v45  ;;  %v951_v42 = vcombine.high %v3656_v52, %v3668_v8  ;;  %v967_v21 = vcombine.high %v3784_v43, %v3769_v51 }
 0x25f   : > { %v935_v52 = vcombine.high %v3641_v22, %v3658_v15  ;;  %v795_v8 = vrot.slane %v781_v5, %v3185_v20 }
 0x260   : > { %v3734_v58 = vpop.permute.xlu1 %1625  ;;  %v3736_v37 = vpop.permute.xlu0 %1629  ;;  %v965_v22 = vrot.slane %v951_v42, %v3185_v20 }
 0x261   : > { %v949_v26 = vrot.slane %v935_v52, %v3185_v20  ;;  %v812_v13 = vcombine.low %v779_v17, %v795_v8  ;;  %v796_v52 = vcombine.low %v3779_v29, %v3764_v16 }
 0x262   : > { %2061 = vrot.lane.b32.xlu1 %v2021_v57, %s2953_s22  ;;  %2025 = vrot.lane.b32.xlu0 %v1952_v31, %s2952_s20  ;;  %v2023_v57 = vcombine.high %v3677_v0, %v4708_v60  ;;  %v3811_v31 = vrot.slane %v696_v30, %v3185_v20  ;;  %v1017_v30 = vrot.slane %v1003_v33, %v3185_v20 }
 0x263   : > { %v982_v23 = vcombine.low %v949_v26, %v965_v22  ;;  %v3887_v16 = vrot.slane %v796_v52, %v3503_v48 }
 0x264   : > { %v3750_v49 = vpop.permute.xlu1 %1633  ;;  %v3752_v11 = vpop.permute.xlu0 %2096  ;;  %v729_v0 = vcombine.high %v3811_v31, %v3793_v1  ;;  %v1051_v62 = vcombine.high %v1017_v30, %v1033_v2  ;;  %v728_v29 = vcombine.low %v3811_v31, %v3793_v1 }
 0x265   : > { %v3867_v19 = vrot.slane %v982_v23, %v3503_v48  ;;  %4726 = vst [vmem:[#allocation13_spill] sm:$0xff] %v3887_v16  ;;  %v828_v31 = vcombine.high %v3887_v16, %v4708_v60 }
 0x266   : > { %2069 = vrot.lane.b32.xlu1 %v2022_v44, %s2954_s26  ;;  %2033 = vrot.lane.b32.xlu0 %v1953_v32, %s2953_s22  ;;  %v3834_v44 = vrot.slane %v967_v21, %v3503_v48  ;;  %v1002_v32 = vcombine.low %v3607_v6, %v3625_v9  ;;  %v743_v12 = vrot.slane %v729_v0, %v3503_v48 }
 0x267   : > { %v3854_v6 = vrot.slane %v745_v40, %v3503_v48  ;;  %v813_v0 = vcombine.high %v779_v17, %v795_v8  ;;  %v983_v40 = vcombine.high %v949_v26, %v965_v22  ;;  %v3880_v33 = vrot.slane %v1051_v62, %v3503_v48 }
 0x268   : > { %v3771_v24 = vpop.permute.xlu1 %2100  ;;  %v3773_v46 = vpop.permute.xlu0 %2104  ;;  %v1010_v9 = vrot.slane %v1002_v32, %v3185_v20  ;;  %v1050_v22 = vcombine.low %v1017_v30, %v1033_v2  ;;  %v3912_v2 = vrot.slane %v728_v29, %v3503_v48 }
 0x269   : > { %v3896_v23 = vrot.slane %v983_v40, %v3503_v48  ;;  %v966_v40 = vcombine.low %v3784_v43, %v3769_v51 }
 0x26a   : > { %2041 = vrot.lane.b32.xlu1 %v1954_v56, %s2954_s26  ;;  %2049 = vrot.lane.b32.xlu0 %v1955_v36, %s2955_s27  ;;  %v1035_v5 = vcombine.high %v1010_v9, %v1026_v35  ;;  %v1034_v8 = vcombine.low %v1010_v9, %v1026_v35  ;;  %v1058_v1 = vrot.slane %v1050_v22, %v3503_v48 }
 0x26b   : > { %4729 = vst [vmem:[#allocation16_spill] sm:$0xff] %v3912_v2  ;;  %v3940_v51 = vrot.slane %v966_v40, %v3503_v48 }
 0x26c   : > { %v3799_v45 = vpop.permute.xlu1 %2108  ;;  %v3801_v53 = vpop.permute.xlu0 %1391  ;;  %v1049_v32 = vrot.slane %v1035_v5, %v3503_v48  ;;  %v3909_v35 = vrot.slane %v1034_v8, %v3503_v48 }
 0x26d   : > { %4730 = vst [vmem:[#allocation17_spill] sm:$0xff] %v3940_v51 }
 0x26e   : > { %2077 = vrot.lane.b32.xlu1 %v2023_v57, %s2955_s27  ;;  %845 = vrot.lane.b32.xlu0 %v3806_v3, %s2950_s17  ;;  %v820_v57 = vrot.slane %v812_v13, %v3503_v48  ;;  %v827_v13 = vrot.slane %v813_v0, %v3503_v48  ;;  %4728 = vst [vmem:[#allocation15_spill] sm:$0xff] %v3909_v35 }
 0x26f   : > { %v1066_v52 = vcombine.high %v3909_v35, %v4708_v60  ;;  %v760_v0 = vcombine.high %v3912_v2, %v4708_v60 }
 0x270   : > { %v3829_v15 = vpop.permute.xlu1 %1395  ;;  %v3831_v47 = vpop.permute.xlu0 %1399  ;;  %v830_v22 = vcombine.high %v820_v57, %v4708_v60 }
 0x272   : > { %865 = vrot.lane.b32.xlu1 %v3822_v41, %s2949_s8  ;;  %1075 = vrot.lane.b32.xlu0 %v3834_v44, %s2949_s8 }
 0x274   : > { %v3849_v56 = vpop.permute.xlu1 %1403  ;;  %v3851_v36 = vpop.permute.xlu0 %1389 }
 0x276   : > { %837 = vrot.lane.b32.xlu1 %v743_v12, %s2949_s8  ;;  %853 = vrot.lane.b32.xlu0 %v3854_v6, %s2951_s19 }
 0x278   : > { %v3861_v42 = vpop.permute.xlu1 %1393  ;;  %v3863_v21 = vpop.permute.xlu0 %1397 }
 0x27a   : > { %873 = vrot.lane.b32.xlu1 %v820_v57, %s2950_s17  ;;  %1083 = vrot.lane.b32.xlu0 %v3867_v19, %s2950_s17  ;;  %v831_v57 = vcombine.high %v827_v13, %v4708_v60 }
 0x27c   : > { %v3874_v28 = vpop.permute.xlu1 %1401  ;;  %v3876_v7 = vpop.permute.xlu0 %2336 }
 0x27e   : > { %1103 = vrot.lane.b32.xlu1 %v1049_v32, %s2949_s8  ;;  %1119 = vrot.lane.b32.xlu0 %v3880_v33, %s2951_s19 }
 0x280   : > { %v3891_v17 = vpop.permute.xlu1 %2340  ;;  %v3893_v26 = vpop.permute.xlu0 %2344 }
 0x282   : > { %881 = vrot.lane.b32.xlu1 %v827_v13, %s2951_s19  ;;  %1091 = vrot.lane.b32.xlu0 %v3896_v23, %s2951_s19  ;;  %v1729_v13 = vcombine.low %v3682_v27, %v3696_v4 }
 0x284   : > { %v3901_v5 = vpop.permute.xlu1 %2348  ;;  %v3903_v62 = vpop.permute.xlu0 %2334  ;;  %v3977_v16 = vrot.slane %v1729_v13, %v3185_v20 }
 0x285   : > { %4727 = vst [vmem:[#allocation14_spill] sm:$0xff] %v3903_v62 }
 0x286   : > { %1111 = vrot.lane.b32.xlu1 %v1058_v1, %s2950_s17  ;;  %861 = vrot.lane.b32.xlu0 %v828_v31, %s2952_s20  ;;  %v829_v31 = vcombine.high %v3822_v41, %v4708_v60 }
 0x288   : > { %v3916_v9 = vpop.permute.xlu1 %2338  ;;  %v3918_v30 = vpop.permute.xlu0 %2342 }
 0x28a   : > { %1099 = vrot.lane.b32.xlu1 %v1066_v52, %s2952_s20  ;;  %833 = vrot.lane.b32.xlu0 %v760_v0, %s2952_s20  ;;  %v1067_v52 = vcombine.high %v1049_v32, %v4708_v60  ;;  %v761_v0 = vcombine.high %v743_v12, %v4708_v60  ;;  %v2136_v12 = vcombine.low %v3771_v24, %v3799_v45 }
 0x28c   : > { %v3928_v29 = vpop.permute.xlu1 %2346  ;;  %v591_v8 = vpop.permute.xlu0 %590 }
 0x28e   : > { %877 = vrot.lane.b32.xlu1 %v830_v22, %s2954_s26  ;;  %869 = vrot.lane.b32.xlu0 %v829_v31, %s2953_s22  ;;  %v998_v22 = vcombine.high %v3940_v51, %v4708_v60  ;;  %v1068_v31 = vcombine.high %v1058_v1, %v4708_v60  ;;  %v1713_v1 = vcombine.low %v3670_v10, %v3684_v34 }
 0x290   : > { %v619_v2 = vpop.permute.xlu1 %618  ;;  %v3935_v35 = vpop.permute.xlu0 %598  ;;  %v3994_v13 = vrot.slane %v1713_v1, %v3185_v20 }
 0x292   : > { %1107 = vrot.lane.b32.xlu1 %v1067_v52, %s2953_s22  ;;  %841 = vrot.lane.b32.xlu0 %v761_v0, %s2953_s22  ;;  %v762_v52 = vcombine.high %v3806_v3, %v4708_v60  ;;  %v1000_v3 = vcombine.high %v3867_v19, %v4708_v60 }
 0x294   : > { %v627_v43 = vpop.permute.xlu1 %626  ;;  %v3944_v41 = vpop.permute.xlu0 %606 }
 0x296   : > { %885 = vrot.lane.b32.xlu1 %v831_v57, %s2955_s27  ;;  %1071 = vrot.lane.b32.xlu0 %v998_v22, %s2952_s20  ;;  %v2120_v57 = vcombine.low %v3752_v11, %v3773_v46  ;;  %v3969_v22 = vrot.slane %v2136_v12, %v3185_v20  ;;  %v763_v12 = vcombine.high %v3854_v6, %v4708_v60 }
 0x297   : > { %v1662_v6 = vcombine.high %v3734_v58, %v3750_v49 }
 0x298   : > { %v635_v32 = vpop.permute.xlu1 %634  ;;  %v615_v40 = vpop.permute.xlu0 %614 }
 0x299   : > { %v655_v0 = vsel %vm641_vm8, %v3534_v63, %v615_v40  ;;  %v1429_v63 = vcombine.low %v3861_v42, %v3874_v28 }
 0x29a   : > { %1115 = vrot.lane.b32.xlu1 %v1068_v31, %s2954_s26  ;;  %849 = vrot.lane.b32.xlu0 %v762_v52, %s2954_s26  ;;  %v656_v31 = vsel %vm643_vm9, %v655_v0, %v619_v2  ;;  %v999_v52 = vcombine.high %v3834_v44, %v4708_v60  ;;  %v3987_v2 = vrot.slane %v2120_v57, %v3185_v20 }
 0x29b   : > { %v1413_v44 = vcombine.low %v3851_v36, %v3863_v21  ;;  %v4005_v57 = vrot.slane %v1429_v63, %v3185_v20  ;;  %v1746_v63 = vcombine.high %v3994_v13, %v3977_v16 }
 0x29c   : > { %v623_v40 = vpop.permute.xlu1 %622  ;;  %v587_v51 = vpop.permute.xlu0 %586  ;;  %4731 = vst [vmem:[#allocation18_spill] sm:$0xff] %v3987_v2  ;;  %v2153_v0 = vcombine.high %v3987_v2, %v3969_v22  ;;  %v4018_v2 = vrot.slane %v2188_v18, %v3185_v20  ;;  %v2137_v18 = vcombine.high %v3771_v24, %v3799_v45 }
 0x29d   : > { %v657_v19 = vsel %vm645_vm10, %v656_v31, %v623_v40  ;;  %v642_v39 = vsel %vm641_vm8, %v3548_v25, %v587_v51  ;;  %v2204_v25 = vcombine.low %v3711_v50, %v3721_v54  ;;  %v1069_v51 = vcombine.high %v3880_v33, %v4708_v60 }
 0x29e   : > { %1087 = vrot.lane.b32.xlu1 %v1000_v3, %s2954_s26  ;;  %1079 = vrot.lane.b32.xlu0 %v999_v52, %s2953_s22  ;;  %v658_v40 = vsel %vm647_vm11, %v657_v19, %v627_v43  ;;  %v644_v1 = vsel %vm643_vm9, %v642_v39, %v591_v8  ;;  %v1646_v52 = vcombine.high %v3723_v59, %v3736_v37 }
 0x29f   : > { %v1001_v33 = vcombine.high %v3896_v23, %v4708_v60  ;;  %v4021_v43 = vrot.slane %v1413_v44, %v3185_v20  ;;  %v4026_v39 = vrot.slane %v2204_v25, %v3185_v20  ;;  %v1661_v23 = vcombine.low %v3734_v58, %v3750_v49 }
 0x2a0   : > { %v631_v3 = vpop.permute.xlu1 %630  ;;  %v595_v31 = vpop.permute.xlu0 %594  ;;  %v4031_v8 = vrot.slane %v1662_v6, %v3185_v20  ;;  %v1645_v58 = vcombine.low %v3723_v59, %v3736_v37  ;;  %v4046_v49 = vrot.slane %v1646_v52, %v3185_v20 }
 0x2a1   : > { %v659_v61 = vsel %vm649_vm12, %v658_v40, %v631_v3  ;;  %v646_v62 = vsel %vm645_vm10, %v644_v1, %v595_v31  ;;  %v1446_v19 = vcombine.high %v4021_v43, %v4005_v57  ;;  %v4041_v3 = vrot.slane %v2153_v0, %v3503_v48 }
 0x2a2   : > { %1123 = vrot.lane.b32.xlu1 %v1069_v51, %s2955_s27  ;;  %857 = vrot.lane.b32.xlu0 %v763_v12, %s2955_s27  ;;  %v660_v51 = vsel %vm651_vm13, %v659_v61, %v635_v32  ;;  %v648_v12 = vsel %vm647_vm11, %v646_v62, %v3935_v35  ;;  %v2121_v61 = vcombine.high %v3752_v11, %v3773_v46 }
 0x2a3   : > { %v4056_v62 = vrot.slane %v1746_v63, %v3503_v48  ;;  %v2221_v59 = vcombine.high %v4018_v2, %v4026_v39  ;;  %v4061_v37 = vrot.slane %v1661_v23, %v3185_v20  ;;  %v1693_v35 = vcombine.low %v4046_v49, %v4031_v8 }
 0x2a4   : > { %v639_v44 = vpop.permute.xlu1 %638  ;;  %v603_v25 = vpop.permute.xlu0 %602  ;;  %v4066_v11 = vrot.slane %v2137_v18, %v3185_v20  ;;  %v1497_v46 = vcombine.low %v3829_v15, %v3849_v56  ;;  %v1430_v32 = vcombine.high %v3861_v42, %v3874_v28  ;;  %v4077_v1 = vrot.slane %v1446_v19, %v3503_v48 }
 0x2a5   : > { %v661_v24 = vsel %vm653_vm14, %v660_v51, %v639_v44  ;;  %v650_v45 = vsel %vm649_vm12, %v648_v12, %v603_v25  ;;  %v4080_v31 = vrot.slane %v1645_v58, %v3185_v20  ;;  %v1481_v42 = vcombine.low %v3801_v53, %v3831_v47 }
 0x2a6   : > { %663 = vst [vmem:[#allocation3 + $0x8] sm:$0xf] %v661_v24  ;;  %1095 = vrot.lane.b32.xlu1 %v1001_v33, %s2955_s27  ;;  %2261 = vrot.lane.b32.xlu0 %v4041_v3, %s2949_s8  ;;  %v652_v0 = vsel %vm651_vm13, %v650_v45, %v3944_v41  ;;  %v4084_v33 = vrot.slane %v2121_v61, %v3185_v20 }
 0x2a7   : > { %v1414_v28 = vcombine.high %v3851_v36, %v3863_v21  ;;  %v1730_v41 = vcombine.high %v3682_v27, %v3696_v4  ;;  %v1678_v63 = vcombine.high %v4080_v31, %v4061_v37  ;;  %v4099_v23 = vrot.slane %v2221_v59, %v3503_v48 }
 0x2a8   : > { %v4072_v6 = vpop.permute.xlu1 %1344  ;;  %v611_v40 = vpop.permute.xlu0 %610  ;;  %v2168_v18 = vcombine.low %v4084_v33, %v4066_v11  ;;  %v4104_v36 = vrot.slane %v1497_v46, %v3185_v20  ;;  %v4107_v21 = vrot.slane %v1430_v32, %v3185_v20  ;;  %v4114_v27 = vrot.slane %v1693_v35, %v3503_v48 }
 0x2a9   : > { %v654_v52 = vsel %vm653_vm14, %v652_v0, %v611_v40  ;;  %v1714_v4 = vcombine.high %v3670_v10, %v3684_v34  ;;  %v4119_v51 = vrot.slane %v1481_v42, %v3185_v20  ;;  %v1428_v12 = vrot.slane %v1414_v28, %v3185_v20 }
 0x2aa   : > { %662 = vst [vmem:[#allocation3] sm:$0xf] %v654_v52  ;;  %1814 = vrot.lane.b32.xlu1 %v4056_v62, %s2949_s8  ;;  %1554 = vrot.lane.b32.xlu0 %v4077_v1, %s2949_s8  ;;  %v4127_v25 = vrot.slane %v1730_v41, %v3185_v20  ;;  %v2205_v58 = vcombine.high %v3711_v50, %v3721_v54 }
 0x2ab   : > { %v1514_v10 = vcombine.high %v4119_v51, %v4104_v36  ;;  %v1461_v34 = vcombine.low %v1428_v12, %v4107_v21  ;;  %v4139_v61 = vrot.slane %v1678_v63, %v3503_v48  ;;  %v4142_v59 = vrot.slane %v2168_v18, %v3503_v48 }
 0x2ac   : > { %v4109_v19 = vpop.permute.xlu1 %1352  ;;  %v4111_v44 = vpop.permute.xlu0 %1316  ;;  %v2189_v35 = vcombine.high %v3698_v14, %v3713_v55  ;;  %v1728_v50 = vrot.slane %v1714_v4, %v3185_v20  ;;  %v4152_v54 = vrot.slane %v2205_v58, %v3185_v20  ;;  %v1498_v46 = vcombine.high %v3829_v15, %v3849_v56 }
 0x2ad   : > { %v1694_v0 = vcombine.high %v4046_v49, %v4031_v8  ;;  %v4164_v40 = vrot.slane %v1514_v10, %v3503_v48  ;;  %v4167_v52 = vrot.slane %v1461_v34, %v3503_v48  ;;  %v1482_v15 = vcombine.high %v3801_v53, %v3831_v47 }
 0x2ae   : > { %2289 = vrot.lane.b32.xlu1 %v4099_v23, %s2949_s8  ;;  %1794 = vrot.lane.b32.xlu0 %v4114_v27, %s2950_s17  ;;  %v1761_v32 = vcombine.low %v1728_v50, %v4127_v25  ;;  %v2203_v42 = vrot.slane %v2189_v35, %v3185_v20  ;;  %v4178_v8 = vrot.slane %v1498_v46, %v3185_v20 }
 0x2af   : > { %v2169_v49 = vcombine.high %v4084_v33, %v4066_v11  ;;  %v2442_v28 = vcombine.low %v3891_v17, %v3901_v5  ;;  %v4192_v63 = vrot.slane %v1694_v0, %v3503_v48  ;;  %v1496_v18 = vrot.slane %v1482_v15, %v3185_v20 }
 0x2b0   : > { %v4134_v24 = vpop.permute.xlu1 %1360  ;;  %v4136_v45 = vpop.permute.xlu0 %1324  ;;  %v2236_v56 = vcombine.low %v2203_v42, %v4152_v54  ;;  %v4189_v47 = vrot.slane %v1761_v32, %v3503_v48  ;;  %v2426_v4 = vcombine.low %v3876_v7, %v3893_v26  ;;  %v1462_v58 = vcombine.high %v1428_v12, %v4107_v21 }
 0x2b1   : > { %v1529_v11 = vcombine.low %v1496_v18, %v4178_v8  ;;  %v2443_v10 = vcombine.high %v3891_v17, %v3901_v5  ;;  %v4209_v34 = vrot.slane %v2442_v28, %v3185_v20  ;;  %v4214_v32 = vrot.slane %v2169_v49, %v3503_v48 }
 0x2b2   : > { %1786 = vrot.lane.b32.xlu1 %v4139_v61, %s2949_s8  ;;  %2269 = vrot.lane.b32.xlu0 %v4142_v59, %s2950_s17  ;;  %v4203_v33 = vrot.slane %v2236_v56, %v3503_v48  ;;  %v2427_v15 = vcombine.high %v3876_v7, %v3893_v26  ;;  %v4221_v21 = vrot.slane %v2426_v4, %v3185_v20 }
 0x2b3   : > { %v1762_v17 = vcombine.high %v1728_v50, %v4127_v25  ;;  %v4229_v5 = vrot.slane %v1529_v11, %v3503_v48  ;;  %v2457_v12 = vrot.slane %v2443_v10, %v3185_v20  ;;  %v4239_v49 = vrot.slane %v1462_v58, %v3503_v48 }
 0x2b4   : > { %v4159_v14 = vpop.permute.xlu1 %2057  ;;  %v4161_v55 = vpop.permute.xlu0 %1332  ;;  %v2441_v25 = vrot.slane %v2427_v15, %v3185_v20  ;;  %v2237_v50 = vcombine.high %v2203_v42, %v4152_v54  ;;  %v2374_v11 = vcombine.low %v3916_v9, %v3928_v29  ;;  %v4733_v54 = vld [vmem:[#allocation14_spill] sm:$0xff] }
 0x2b5   : > { %v2358_v42 = vcombine.low %v4733_v54, %v3918_v30 }
 0x2b6   : > { %1582 = vrot.lane.b32.xlu1 %v4164_v40, %s2949_s8  ;;  %1562 = vrot.lane.b32.xlu0 %v4167_v52, %s2950_s17  ;;  %v2474_v4 = vcombine.low %v2441_v25, %v2457_v12 }
 0x2b8   : > { %v4184_v41 = vpop.permute.xlu1 %2065  ;;  %v4186_v53 = vpop.permute.xlu0 %2029 }
 0x2ba   : > { %1822 = vrot.lane.b32.xlu1 %v4189_v47, %s2950_s17  ;;  %1802 = vrot.lane.b32.xlu0 %v4192_v63, %s2951_s19 }
 0x2bc   : > { %v1341_v35 = vpop.permute.xlu1 %1340  ;;  %v4211_v46 = vpop.permute.xlu0 %2037 }
 0x2bd   : > { %v1374_v0 = vsel %vm641_vm8, %v3652_v38, %v1341_v35  ;;  %v2459_v38 = vcombine.high %v4221_v21, %v4209_v34 }
 0x2be   : > { %2297 = vrot.lane.b32.xlu1 %v4203_v33, %s2950_s17  ;;  %2277 = vrot.lane.b32.xlu0 %v4214_v32, %s2951_s19  ;;  %v1375_v7 = vsel %vm643_vm9, %v1374_v0, %v4072_v6  ;;  %v4249_v6 = vrot.slane %v1762_v17, %v3503_v48  ;;  %v1530_v17 = vcombine.high %v1496_v18, %v4178_v8 }
 0x2bf   : > { %v4258_v0 = vrot.slane %v2459_v38, %v3503_v48  ;;  %v4271_v38 = vrot.slane %v2237_v50, %v3503_v48  ;;  %v2359_v18 = vcombine.high %v4733_v54, %v3918_v30  ;;  %v4735_v54 = vld [vmem:[#allocation18_spill] sm:$0xff] }
 0x2c0   : > { %v1349_v26 = vpop.permute.xlu1 %1348  ;;  %v4236_v56 = vpop.permute.xlu0 %2073 }
 0x2c1   : > { %v1376_v28 = vsel %vm645_vm10, %v1375_v7, %v1349_v26  ;;  %4732 = vst [vmem:[#allocation19_spill] sm:$0xff] %v4258_v0  ;;  %v2475_v7 = vcombine.high %v2441_v25, %v2457_v12  ;;  %v2375_v26 = vcombine.high %v3916_v9, %v3928_v29  ;;  %v4289_v9 = vrot.slane %v2358_v42, %v3185_v20 }
 0x2c2   : > { %1590 = vrot.lane.b32.xlu1 %v4229_v5, %s2950_s17  ;;  %1570 = vrot.lane.b32.xlu0 %v4239_v49, %s2951_s19  ;;  %v1377_v58 = vsel %vm647_vm11, %v1376_v28, %v4109_v19  ;;  %v1745_v19 = vcombine.low %v3994_v13, %v3977_v16  ;;  %v4276_v28 = vrot.slane %v2374_v11, %v3185_v20  ;;  %v4734_v13 = vld [vmem:[#allocation10_spill] sm:$0xff] }
 0x2c3   : > { %v4298_v12 = vrot.slane %v1530_v17, %v3503_v48  ;;  %v2389_v30 = vrot.slane %v2375_v26, %v3185_v20  ;;  %v2152_v42 = vcombine.low %v4735_v54, %v3969_v22 }
 0x2c4   : > { %v1357_v10 = vpop.permute.xlu1 %1356  ;;  %v4255_v35 = vpop.permute.xlu0 %2045  ;;  %v2391_v25 = vcombine.high %v4289_v9, %v4276_v28 }
 0x2c5   : > { %v1378_v15 = vsel %vm649_vm12, %v1377_v58, %v1357_v10 }
 0x2c6   : > { %1830 = vrot.lane.b32.xlu1 %v4249_v6, %s2951_s19  ;;  %2527 = vrot.lane.b32.xlu0 %v4258_v0, %s2949_s8  ;;  %v1379_v58 = vsel %vm651_vm13, %v1378_v15, %v4134_v24  ;;  %v4281_v0 = vrot.slane %v2474_v4, %v3503_v48  ;;  %v1677_v24 = vcombine.low %v4080_v31, %v4061_v37 }
 0x2c7   : > { %v4309_v15 = vrot.slane %v2475_v7, %v3503_v48  ;;  %v2373_v31 = vrot.slane %v2359_v18, %v3185_v20  ;;  %v4341_v18 = vrot.slane %v2152_v42, %v3503_v48 }
 0x2c8   : > { %v1365_v10 = vpop.permute.xlu1 %1364  ;;  %v1313_v60 = vpop.permute.xlu0 %1312 }
 0x2c9   : > { %v1380_v16 = vsel %vm653_vm14, %v1379_v58, %v1365_v10  ;;  %v1367_v8 = vsel %vm641_vm8, %v4734_v13, %v1313_v60  ;;  %v4301_v60 = vrot.slane %v1745_v19, %v3503_v48  ;;  %v4320_v19 = vrot.slane %v1677_v24, %v3503_v48 }
 0x2ca   : > { %v1384_v29 = vrot.slane %v1380_v16, 4  ;;  %2305 = vrot.lane.b32.xlu1 %v4271_v38, %s2951_s19  ;;  %2535 = vrot.lane.b32.xlu0 %v4281_v0, %s2950_s17  ;;  %v1368_v4 = vsel %vm643_vm9, %v1367_v8, %v4111_v44  ;;  %v2406_v44 = vcombine.low %v2373_v31, %v2389_v30  ;;  %v4736_v58 = vmov 0.0  }
 0x2cb   : > { %v1777_v20 = vcombine.high %v4301_v60, %v4736_v58  ;;  %v4327_v10 = vrot.slane %v2391_v25, %v3503_v48  ;;  %v1709_v8 = vcombine.high %v4320_v19, %v4736_v58 }
 0x2cc   : > { %1388 = vst [vmem:[#allocation3 + $0x18] sm:$0xf0] %v1384_v29  ;;  %v2054_v50 = vpop.permute.xlu1 %2053  ;;  %v1321_v11 = vpop.permute.xlu0 %1320  ;;  %v1513_v29 = vcombine.low %v4119_v51, %v4104_v36  ;;  %v2184_v36 = vcombine.high %v4341_v18, %v4736_v58 }
 0x2cd   : > { %v1369_v37 = vsel %vm645_vm10, %v1368_v4, %v1321_v11  ;;  %v4346_v11 = vrot.slane %v2406_v44, %v3503_v48 }
 0x2ce   : > { %1598 = vrot.lane.b32.xlu1 %v4298_v12, %s2951_s19  ;;  %2543 = vrot.lane.b32.xlu0 %v4309_v15, %s2951_s19  ;;  %v1370_v7 = vsel %vm647_vm11, %v1369_v37, %v4136_v45  ;;  %v2220_v45 = vcombine.low %v4018_v2, %v4026_v39  ;;  %v4737_v37 = vld [vmem:[#allocation11_spill] sm:$0xff]  ;;  %v4738_v39 = vld [vmem:[#allocation12_spill] sm:$0xff] }
 0x2cf   : > { %v2087_v2 = vsel %vm641_vm8, %v4737_v37, %v2054_v50 }
 0x2d0   : > { %v1337_v17 = vpop.permute.xlu1 %1336  ;;  %v1329_v26 = vpop.permute.xlu0 %1328  ;;  %v4358_v51 = vrot.slane %v2220_v45, %v3503_v48 }
 0x2d1   : > { %v1371_v16 = vsel %vm649_vm12, %v1370_v7, %v1329_v26 }
 0x2d2   : > { %v1372_v22 = vsel %vm651_vm13, %v1371_v16, %v4161_v55  ;;  %1810 = vrot.lane.b32.xlu0 %v1777_v20, %s2952_s20  ;;  %2499 = vrot.lane.b32.xlu1 %v4327_v10, %s2949_s8  ;;  %v2407_v55 = vcombine.high %v2373_v31, %v2389_v30  ;;  %v2088_v30 = vsel %vm643_vm9, %v2087_v2, %v4159_v14  ;;  %s4650_s8 = scalar_lea.hbm %s4697_s3, %s2768_s11 }
 0x2d3   : > { %v1373_v13 = vsel %vm653_vm14, %v1372_v22, %v1337_v17  ;;  %v4368_v17 = vrot.slane %v1513_v29, %v3503_v48  ;;  %v2252_v14 = vcombine.high %v4358_v51, %v4736_v58  ;;  %v1546_v2 = vcombine.high %v4164_v40, %v4736_v58 }
 0x2d4   : > { %v1383_v24 = vrot.slane %v1373_v13, 4  ;;  %v2062_v25 = vpop.permute.xlu1 %2061  ;;  %v2026_v4 = vpop.permute.xlu0 %2025  ;;  %v4365_v44 = vrot.slane %v2407_v55, %v3503_v48 }
 0x2d5   : > { %v2080_v54 = vsel %vm641_vm8, %v4738_v39, %v2026_v4  ;;  %v2089_v7 = vsel %vm645_vm10, %v2088_v30, %v2062_v25  ;;  %v1545_v13 = vcombine.high %v4368_v17, %v4736_v58  ;;  %v1778_v25 = vcombine.high %v4056_v62, %v4736_v58 }
 0x2d6   : > { %1387 = vst [vmem:[#allocation3 + $0x10] sm:$0xf0] %v1383_v24  ;;  %1782 = vrot.lane.b32.xlu0 %v1709_v8, %s2952_s20  ;;  %2507 = vrot.lane.b32.xlu1 %v4346_v11, %s2950_s17  ;;  %v2081_v50 = vsel %vm643_vm9, %v2080_v54, %v4186_v53  ;;  %v1445_v53 = vcombine.low %v4021_v43, %v4005_v57  ;;  %s2666_s17 = scalar_lea.sflag [#allocation6], %s3082_s5 }
 0x2d7   : > { %v2090_v20 = vsel %vm647_vm11, %v2089_v7, %v4184_v41  ;;  %v2253_v24 = vcombine.high %v4099_v23, %v4736_v58  ;;  %v1779_v54 = vcombine.high %v4189_v47, %v4736_v58  ;;  %v1478_v7 = vcombine.high %v4077_v1, %v4736_v58 }
 0x2d8   : > { %v2070_v31 = vpop.permute.xlu1 %2069  ;;  %v2034_v42 = vpop.permute.xlu0 %2033  ;;  %v2255_v1 = vcombine.high %v4271_v38, %v4736_v58 }
 0x2d9   : > { %v2082_v26 = vsel %vm645_vm10, %v2081_v50, %v2034_v42  ;;  %v2091_v8 = vsel %vm649_vm12, %v2090_v20, %v2070_v31  ;;  %v2254_v31 = vcombine.high %v4203_v33, %v4736_v58  ;;  %v2185_v50 = vcombine.high %v4041_v3, %v4736_v58 }
 0x2da   : > { %2515 = vrot.lane.b32.xlu1 %v4365_v44, %s2951_s19  ;;  %2257 = vrot.lane.b32.xlu0 %v2184_v36, %s2952_s20  ;;  %v2083_v22 = vsel %vm647_vm11, %v2082_v26, %v4211_v46  ;;  %v2092_v41 = vsel %vm651_vm13, %v2091_v8, %v4236_v56  ;;  %v1710_v36 = vcombine.high %v4139_v61, %v4736_v58  ;;  %s2957_s19 = smov [#allocation7]  }
 0x2db   : > { %v1547_v61 = vcombine.high %v4229_v5, %v4736_v58  ;;  %v1780_v3 = vcombine.high %v4249_v6, %v4736_v58  ;;  %v2186_v20 = vcombine.high %v4142_v59, %v4736_v58  ;;  %v2458_v6 = vcombine.low %v4221_v21, %v4209_v34 }
 0x2dc   : > { %v2042_v16 = vpop.permute.xlu1 %2041  ;;  %v2050_v45 = vpop.permute.xlu0 %2049  ;;  %v1712_v59 = vcombine.high %v4192_v63, %v4736_v58  ;;  %v2390_v34 = vcombine.low %v4289_v9, %v4276_v28  ;;  %v1480_v9 = vcombine.high %v4239_v49, %v4736_v58  ;;  %v4740_v49 = vld [vmem:[#allocation19_spill] sm:$0xff] }
 0x2dd   : > { %v2084_v29 = vsel %vm649_vm12, %v2083_v22, %v2042_v16  ;;  %v2187_v22 = vcombine.high %v4214_v32, %v4736_v58 }
 0x2de   : > { %v2085_v55 = vsel %vm651_vm13, %v2084_v29, %v4255_v35  ;;  %2285 = vrot.lane.b32.xlu1 %v2252_v14, %s2952_s20  ;;  %1578 = vrot.lane.b32.xlu0 %v1545_v13, %s2952_s20  ;;  %v4401_v35 = vrot.slane %v1445_v53, %v3503_v48  ;;  %v1711_v14 = vcombine.high %v4114_v27, %v4736_v58  ;;  %v4739_v13 = vld [vmem:[#allocation13_spill] sm:$0xff] }
 0x2df   : > { %v2086_v57 = vsel %vm653_vm14, %v2085_v55, %v2050_v45  ;;  %v1479_v45 = vcombine.high %v4167_v52, %v4736_v58  ;;  %v1548_v52 = vcombine.high %v4298_v12, %v4736_v58  ;;  %v4472_v29 = vrot.slane %v2458_v6, %v3503_v48 }
 0x2e0   : > { %2094 = vst [vmem:[#allocation3 + $0x30] sm:$0xf] %v2086_v57  ;;  %v2078_v43 = vpop.permute.xlu1 %2077  ;;  %v4394_v46 = vpop.permute.xlu0 %845  ;;  %v1477_v23 = vcombine.high %v4401_v35, %v4736_v58  ;;  %v4483_v12 = vrot.slane %v2390_v34, %v3503_v48  ;;  %v2425_v34 = vcombine.high %v4365_v44, %v4736_v58 }
 0x2e1   : > { %v2093_v4 = vsel %vm653_vm14, %v2092_v41, %v2078_v43  ;;  %v2490_v43 = vcombine.high %v4472_v29, %v4736_v58 }
 0x2e2   : > { %2095 = vst [vmem:[#allocation3 + $0x38] sm:$0xf] %v2093_v4  ;;  %2293 = vrot.lane.b32.xlu1 %v2253_v24, %s2953_s22  ;;  %1818 = vrot.lane.b32.xlu0 %v1778_v25, %s2953_s22 }
 0x2e4   : > { %v866_v37 = vpop.permute.xlu1 %865  ;;  %v4406_v56 = vpop.permute.xlu0 %1075 }
 0x2e6   : > { %1586 = vrot.lane.b32.xlu1 %v1546_v2, %s2953_s22  ;;  %1550 = vrot.lane.b32.xlu0 %v1477_v23, %s2952_s20  ;;  %v2491_v2 = vcombine.high %v4740_v49, %v4736_v58  ;;  %v4741_v23 = vld [vmem:[#allocation15_spill] sm:$0xff] }
 0x2e8   : > { %v4414_v62 = vpop.permute.xlu1 %837  ;;  %v4416_v39 = vpop.permute.xlu0 %853 }
 0x2ea   : > { %1826 = vrot.lane.b32.xlu1 %v1779_v54, %s2954_s26  ;;  %1790 = vrot.lane.b32.xlu0 %v1710_v36, %s2953_s22  ;;  %v4742_v54 = vld [vmem:[#allocation16_spill] sm:$0xff] }
 0x2ec   : > { %v874_v40 = vpop.permute.xlu1 %873  ;;  %v4424_v30 = vpop.permute.xlu0 %1083 }
 0x2ee   : > { %2301 = vrot.lane.b32.xlu1 %v2254_v31, %s2954_s26  ;;  %2265 = vrot.lane.b32.xlu0 %v2185_v50, %s2953_s22 }
 0x2f0   : > { %v1104_v47 = vpop.permute.xlu1 %1103  ;;  %v4432_v42 = vpop.permute.xlu0 %1119 }
 0x2f2   : > { %1594 = vrot.lane.b32.xlu1 %v1547_v61, %s2954_s26  ;;  %1558 = vrot.lane.b32.xlu0 %v1478_v7, %s2953_s22 }
 0x2f4   : > { %v882_v33 = vpop.permute.xlu1 %881  ;;  %v4440_v26 = vpop.permute.xlu0 %1091 }
 0x2f6   : > { %1834 = vrot.lane.b32.xlu1 %v1780_v3, %s2955_s27  ;;  %1798 = vrot.lane.b32.xlu0 %v1711_v14, %s2954_s26  ;;  %v2423_v3 = vcombine.high %v4327_v10, %v4736_v58  ;;  %v2492_v14 = vcombine.high %v4281_v0, %v4736_v58 }
 0x2f8   : > { %v1112_v5 = vpop.permute.xlu1 %1111  ;;  %v862_v53 = vpop.permute.xlu0 %861 }
 0x2f9   : > { %v895_v38 = vsel %vm641_vm8, %v4739_v13, %v862_v53 }
 0x2fa   : > { %2309 = vrot.lane.b32.xlu1 %v2255_v1, %s2955_s27  ;;  %2273 = vrot.lane.b32.xlu0 %v2186_v20, %s2954_s26  ;;  %v896_v8 = vsel %vm643_vm9, %v895_v38, %v866_v37  ;;  %v2422_v37 = vcombine.high %v4483_v12, %v4736_v58  ;;  %v4743_v20 = vld [vmem:[#allocation17_spill] sm:$0xff] }
 0x2fc   : > { %v1100_v27 = vpop.permute.xlu1 %1099  ;;  %v834_v16 = vpop.permute.xlu0 %833 }
 0x2fd   : > { %v1133_v48 = vsel %vm641_vm8, %v4741_v23, %v1100_v27  ;;  %v888_v36 = vsel %vm641_vm8, %v4742_v54, %v834_v16 }
 0x2fe   : > { %2281 = vrot.lane.b32.xlu1 %v2187_v22, %s2955_s27  ;;  %1566 = vrot.lane.b32.xlu0 %v1479_v45, %s2954_s26  ;;  %v1134_v50 = vsel %vm643_vm9, %v1133_v48, %v1104_v47  ;;  %v889_v61 = vsel %vm643_vm9, %v888_v36, %v4414_v62  ;;  %v2493_v62 = vcombine.high %v4309_v15, %v4736_v58 }
 0x2ff   : > { %v2424_v22 = vcombine.high %v4346_v11, %v4736_v58 }
 0x300   : > { %v878_v21 = vpop.permute.xlu1 %877  ;;  %v870_v32 = vpop.permute.xlu0 %869 }
 0x301   : > { %v897_v55 = vsel %vm645_vm10, %v896_v8, %v870_v32 }
 0x302   : > { %v898_v57 = vsel %vm647_vm11, %v897_v55, %v874_v40  ;;  %1602 = vrot.lane.b32.xlu1 %v1548_v52, %s2955_s27  ;;  %1806 = vrot.lane.b32.xlu0 %v1712_v59, %s2955_s27 }
 0x303   : > { %v899_v41 = vsel %vm649_vm12, %v898_v57, %v878_v21 }
 0x304   : > { %v1108_v63 = vpop.permute.xlu1 %1107  ;;  %v842_v28 = vpop.permute.xlu0 %841  ;;  %v900_v25 = vsel %vm651_vm13, %v899_v41, %v882_v33 }
 0x305   : > { %v1135_v53 = vsel %vm645_vm10, %v1134_v50, %v1108_v63  ;;  %v890_v1 = vsel %vm645_vm10, %v889_v61, %v842_v28 }
 0x306   : > { %1574 = vrot.lane.b32.xlu1 %v1480_v9, %s2955_s27  ;;  %2523 = vrot.lane.b32.xlu0 %v2490_v43, %s2952_s20  ;;  %v1136_v47 = vsel %vm647_vm11, %v1135_v53, %v1112_v5  ;;  %v891_v10 = vsel %vm647_vm11, %v890_v1, %v4394_v46  ;;  %v436_v46 = vld [vmem:[%s4696_s2] sm:$0xff] }
 0x308   : > { %v886_v24 = vpop.permute.xlu1 %885  ;;  %v1072_v4 = vpop.permute.xlu0 %1071 }
 0x309   : > { %v901_v40 = vsel %vm653_vm14, %v900_v25, %v886_v24  ;;  %v1126_v6 = vsel %vm641_vm8, %v4743_v20, %v1072_v4 }
 0x30a   : > { %v905_v31 = vrot.slane %v901_v40, 4  ;;  %2495 = vrot.lane.b32.xlu1 %v2422_v37, %s2952_s20  ;;  %2531 = vrot.lane.b32.xlu0 %v2491_v2, %s2953_s22  ;;  %v1127_v27 = vsel %vm643_vm9, %v1126_v6, %v4406_v56  ;;  %s2875_s20 = sshll.u32 %s2957_s19, 4  ;;  %s2876_s20 = int_to_ptr.vmem [resolvable:$false] %s2875_s20 }
 0x30b   : > { %p2878_p8 = scmp.lt.s32.totalorder %s4652_s23, %s2876_s20 }
 0x30c   : > { %909 = vst [vmem:[#allocation3 + $0x8] sm:$0xf0] %v905_v31  ;;  %v1116_v7 = vpop.permute.xlu1 %1115  ;;  %v850_v33 = vpop.permute.xlu0 %849 }
 0x30d   : > { %v1137_v45 = vsel %vm649_vm12, %v1136_v47, %v1116_v7  ;;  %v892_v13 = vsel %vm649_vm12, %v891_v10, %v850_v33 }
 0x30e   : > { %2503 = vrot.lane.b32.xlu1 %v2423_v3, %s2953_s22  ;;  %2539 = vrot.lane.b32.xlu0 %v2492_v14, %s2954_s26  ;;  %v1138_v11 = vsel %vm651_vm13, %v1137_v45, %v4432_v42  ;;  %v893_v5 = vsel %vm651_vm13, %v892_v13, %v4416_v39  ;;  %s2877_s22 = scalar_lea.vmem %s2876_s20, 512 }
 0x30f   : > { %p2879_p10 = scmp.lt.s32.totalorder %s2877_s22, %s2871_s16 }
 0x310   : > { %v1088_v0 = vpop.permute.xlu1 %1087  ;;  %v1080_v16 = vpop.permute.xlu0 %1079 }
 0x311   : > { %v1128_v38 = vsel %vm645_vm10, %v1127_v27, %v1080_v16  ;;  %p2880_p0 = por %p2879_p10, %p2878_p8 }
 0x312   : > { %v1129_v15 = vsel %vm647_vm11, %v1128_v38, %v4424_v30  ;;  %2511 = vrot.lane.b32.xlu1 %v2424_v22, %s2954_s26  ;;  %2547 = vrot.lane.b32.xlu0 %v2493_v62, %s2955_s27  ;;  %v2956_v30 = vmov 0  }
 0x313   : > { %2840 = vset.pattern.permute.xlu0 %v2956_v30  ;;  %v1130_v32 = vsel %vm649_vm12, %v1129_v15, %v1088_v0  ;;  %v2567_v63 = vld [vmem:[#allocation3 + $0x8] sm:$0xff]  ;;  %p2881_p2 = pnand %p2880_p0, %p2874_p13 }
 0x314   : > { %v1124_v56 = vpop.permute.xlu1 %1123  ;;  %v858_v59 = vpop.permute.xlu0 %857  ;;  %v1131_v39 = vsel %vm651_vm13, %v1130_v32, %v4440_v26 }
 0x315   : > { %v1139_v21 = vsel %vm653_vm14, %v1138_v11, %v1124_v56  ;;  %v894_v8 = vsel %vm653_vm14, %v893_v5, %v858_v59 }
 0x316   : > { %1141 = vst [vmem:[#allocation3 + $0x18] sm:$0xf] %v1139_v21  ;;  %v904_v52 = vrot.slane %v894_v8, 4  ;;  %2519 = vrot.lane.b32.xlu1 %v2425_v34, %s2955_s27  ;;  %2578 = vperm.xlu0 %2840, %v436_v46  }
 0x318   : > { %908 = vst [vmem:[#allocation3] sm:$0xf0] %v904_v52  ;;  %v1096_v42 = vpop.permute.xlu1 %1095  ;;  %v2262_v55 = vpop.permute.xlu0 %2261 }
 0x319   : > { %v1132_v58 = vsel %vm653_vm14, %v1131_v39, %v1096_v42 }
 0x31a   : > { %1140 = vst [vmem:[#allocation3 + $0x10] sm:$0xf] %v1132_v58 }
 0x31c   : > { %v1815_v44 = vpop.permute.xlu1 %1814  ;;  %v1555_v57 = vpop.permute.xlu0 %1554 }
 0x31d   : > { %v2569_v28 = vld [vmem:[#allocation3 + $0x18] sm:$0xff] }
 0x31e   : > { %v2769_v9 = vpack.c.bf16 %v2569_v28, %v2567_v63 }
 0x31f   : > { %v2566_v24 = vld [vmem:[#allocation3] sm:$0xff] }
 0x320   : > { %v2290_v43 = vpop.permute.xlu1 %2289  ;;  %2770 = vmatprep.subr.bf16.mxu0 %v2769_v9  ;;  %v1795_v41 = vpop.permute.xlu0 %1794 }
 0x321   : > { %v2568_v25 = vld [vmem:[#allocation3 + $0x10] sm:$0xff] }
 0x322   : > { %v2771_v4 = vpack.c.bf16 %v2568_v25, %v2566_v24 }
 0x324   : > { %v1787_v37 = vpop.permute.xlu1 %1786  ;;  %2772 = vmatpush1.bf16.msra.mxu0 %v2771_v4  ;;  %v2270_v49 = vpop.permute.xlu0 %2269 }
 0x328   : > { %v4545_v2 = vpop.permute.xlu1 %1582  ;;  %v1563_v26 = vpop.permute.xlu0 %1562 }
 0x32c   : > { %v1823_v23 = vpop.permute.xlu1 %1822  ;;  %v1803_v48 = vpop.permute.xlu0 %1802 }
 0x330   : > { %v2298_v54 = vpop.permute.xlu1 %2297  ;;  %v4547_v36 = vpop.permute.xlu0 %2277 }
 0x334   : > { %v4549_v40 = vpop.permute.xlu1 %1590  ;;  %v4551_v31 = vpop.permute.xlu0 %1570 }
 0x338   : > { %v1831_v50 = vpop.permute.xlu1 %1830  ;;  %v4553_v61 = vpop.permute.xlu0 %2527 }
 0x33c   : > { %v2306_v7 = vpop.permute.xlu1 %2305  ;;  %v4555_v33 = vpop.permute.xlu0 %2535 }
 0x340   : > { %v4557_v3 = vpop.permute.xlu1 %1598  ;;  %v4559_v14 = vpop.permute.xlu0 %2543 }
 0x344   : > { %v4561_v53 = vpop.permute.xlu1 %2499  ;;  %v1811_v1 = vpop.permute.xlu0 %1810 }
 0x345   : > { %v1844_v56 = vsel %vm641_vm8, %v4301_v60, %v1811_v1 }
 0x346   : > { %v1845_v34 = vsel %vm643_vm9, %v1844_v56, %v1815_v44 }
 0x348   : > { %v4563_v20 = vpop.permute.xlu1 %2507  ;;  %v1783_v6 = vpop.permute.xlu0 %1782 }
 0x349   : > { %v1837_v13 = vsel %vm641_vm8, %v4320_v19, %v1783_v6 }
 0x34a   : > { %v1838_v15 = vsel %vm643_vm9, %v1837_v13, %v1787_v37 }
 0x34c   : > { %v4565_v62 = vpop.permute.xlu1 %2515  ;;  %v2258_v47 = vpop.permute.xlu0 %2257 }
 0x34d   : > { %v2312_v11 = vsel %vm641_vm8, %v4341_v18, %v2258_v47 }
 0x34e   : > { %v2313_v21 = vsel %vm643_vm9, %v2312_v11, %v2262_v55 }
 0x350   : > { %v2286_v10 = vpop.permute.xlu1 %2285  ;;  %v1579_v0 = vpop.permute.xlu0 %1578 }
 0x351   : > { %v2319_v8 = vsel %vm641_vm8, %v4358_v51, %v2286_v10  ;;  %v1612_v25 = vsel %vm641_vm8, %v4368_v17, %v1579_v0 }
 0x352   : > { %v2320_v42 = vsel %vm643_vm9, %v2319_v8, %v2290_v43 }
 0x354   : > { %v2294_v27 = vpop.permute.xlu1 %2293  ;;  %v1819_v16 = vpop.permute.xlu0 %1818 }
 0x355   : > { %v1846_v32 = vsel %vm645_vm10, %v1845_v34, %v1819_v16  ;;  %v2321_v63 = vsel %vm645_vm10, %v2320_v42, %v2294_v27 }
 0x356   : > { %v1847_v39 = vsel %vm647_vm11, %v1846_v32, %v1823_v23  ;;  %v2322_v9 = vsel %vm647_vm11, %v2321_v63, %v2298_v54 }
 0x358   : > { %v1587_v22 = vpop.permute.xlu1 %1586  ;;  %v1551_v45 = vpop.permute.xlu0 %1550 }
 0x359   : > { %v1605_v60 = vsel %vm641_vm8, %v4401_v35, %v1551_v45 }
 0x35a   : > { %v1606_v55 = vsel %vm643_vm9, %v1605_v60, %v1555_v57 }
 0x35c   : > { %v1827_v38 = vpop.permute.xlu1 %1826  ;;  %v1791_v46 = vpop.permute.xlu0 %1790 }
 0x35d   : > { %v1839_v5 = vsel %vm645_vm10, %v1838_v15, %v1791_v46  ;;  %v1848_v51 = vsel %vm649_vm12, %v1847_v39, %v1827_v38 }
 0x35e   : > { %v1840_v59 = vsel %vm647_vm11, %v1839_v5, %v1795_v41  ;;  %v1849_v24 = vsel %vm651_vm13, %v1848_v51, %v1831_v50 }
 0x360   : > { %v2302_v30 = vpop.permute.xlu1 %2301  ;;  %v2266_v19 = vpop.permute.xlu0 %2265 }
 0x361   : > { %v2314_v18 = vsel %vm645_vm10, %v2313_v21, %v2266_v19  ;;  %v2323_v57 = vsel %vm649_vm12, %v2322_v9, %v2302_v30 }
 0x362   : > { %v2315_v52 = vsel %vm647_vm11, %v2314_v18, %v2270_v49  ;;  %v2324_v54 = vsel %vm651_vm13, %v2323_v57, %v2306_v7 }
 0x364   : > { %v1595_v58 = vpop.permute.xlu1 %1594  ;;  %v1559_v44 = vpop.permute.xlu0 %1558 }
 0x365   : > { %v1607_v28 = vsel %vm645_vm10, %v1606_v55, %v1559_v44 }
 0x366   : > { %v1608_v35 = vsel %vm647_vm11, %v1607_v28, %v1563_v26  ;;  %v1613_v26 = vsel %vm643_vm9, %v1612_v25, %v4545_v2 }
 0x367   : > { %v1614_v6 = vsel %vm645_vm10, %v1613_v26, %v1587_v22 }
 0x368   : > { %v1835_v41 = vpop.permute.xlu1 %1834  ;;  %v1799_v43 = vpop.permute.xlu0 %1798  ;;  %v1615_v0 = vsel %vm647_vm11, %v1614_v6, %v4549_v40 }
 0x369   : > { %v1850_v4 = vsel %vm653_vm14, %v1849_v24, %v1835_v41  ;;  %v1841_v37 = vsel %vm649_vm12, %v1840_v59, %v1799_v43  ;;  %v1616_v7 = vsel %vm649_vm12, %v1615_v0, %v1595_v58 }
 0x36a   : > { %v1854_v49 = vrot.slane %v1850_v4, 4  ;;  %v1842_v23 = vsel %vm651_vm13, %v1841_v37, %v1803_v48  ;;  %v1617_v40 = vsel %vm651_vm13, %v1616_v7, %v4557_v3 }
 0x36c   : > { %1858 = vst [vmem:[#allocation3 + $0x28] sm:$0xf0] %v1854_v49  ;;  %v2310_v50 = vpop.permute.xlu1 %2309  ;;  %v2274_v1 = vpop.permute.xlu0 %2273 }
 0x36d   : > { %v2325_v17 = vsel %vm653_vm14, %v2324_v54, %v2310_v50  ;;  %v2316_v47 = vsel %vm649_vm12, %v2315_v52, %v2274_v1 }
 0x36e   : > { %v2329_v10 = vrot.slane %v2325_v17, 4  ;;  %v2317_v2 = vsel %vm651_vm13, %v2316_v47, %v4547_v36 }
 0x370   : > { %2333 = vst [vmem:[#allocation3 + $0x38] sm:$0xf0] %v2329_v10  ;;  %v2282_v48 = vpop.permute.xlu1 %2281  ;;  %v1567_v27 = vpop.permute.xlu0 %1566 }
 0x371   : > { %v2318_v16 = vsel %vm653_vm14, %v2317_v2, %v2282_v48  ;;  %v1609_v22 = vsel %vm649_vm12, %v1608_v35, %v1567_v27 }
 0x372   : > { %v2328_v45 = vrot.slane %v2318_v16, 4  ;;  %v1610_v13 = vsel %vm651_vm13, %v1609_v22, %v4551_v31 }
 0x374   : > { %2332 = vst [vmem:[#allocation3 + $0x30] sm:$0xf0] %v2328_v45  ;;  %v1603_v38 = vpop.permute.xlu1 %1602  ;;  %v1807_v15 = vpop.permute.xlu0 %1806 }
 0x375   : > { %v1618_v46 = vsel %vm653_vm14, %v1617_v40, %v1603_v38  ;;  %v1843_v36 = vsel %vm653_vm14, %v1842_v23, %v1807_v15 }
 0x376   : > { %1620 = vst [vmem:[#allocation3 + $0x28] sm:$0xf] %v1618_v46  ;;  %v1853_v56 = vrot.slane %v1843_v36, 4 }
 0x377   : > { %v2573_v32 = vld [vmem:[#allocation3 + $0x38] sm:$0xff] }
 0x378   : > { %1857 = vst [vmem:[#allocation3 + $0x20] sm:$0xf0] %v1853_v56  ;;  %v1575_v11 = vpop.permute.xlu1 %1574  ;;  %v2524_v5 = vpop.permute.xlu0 %2523 }
 0x379   : > { %v1611_v59 = vsel %vm653_vm14, %v1610_v13, %v1575_v11  ;;  %v2557_v31 = vsel %vm641_vm8, %v4472_v29, %v2524_v5 }
 0x37a   : > { %1619 = vst [vmem:[#allocation3 + $0x20] sm:$0xf] %v1611_v59  ;;  %v2558_v3 = vsel %vm643_vm9, %v2557_v31, %v4553_v61 }
 0x37c   : > { %v2496_v34 = vpop.permute.xlu1 %2495  ;;  %v2532_v30 = vpop.permute.xlu0 %2531 }
 0x37d   : > { %v2550_v21 = vsel %vm641_vm8, %v4483_v12, %v2496_v34  ;;  %v2559_v19 = vsel %vm645_vm10, %v2558_v3, %v2532_v30  ;;  %v2571_v8 = vld [vmem:[#allocation3 + $0x28] sm:$0xff]  ;;  %v2572_v12 = vld [vmem:[#allocation3 + $0x30] sm:$0xff] }
 0x37e   : > { %v2773_v60 = vpack.c.bf16 %v2573_v32, %v2571_v8  ;;  %v2560_v18 = vsel %vm647_vm11, %v2559_v19, %v4555_v33  ;;  %v2551_v29 = vsel %vm643_vm9, %v2550_v21, %v4561_v53 }
 0x380   : > { %v2504_v52 = vpop.permute.xlu1 %2503  ;;  %2774 = vmatprep.subr.bf16.mxu0 %v2773_v60  ;;  %v2540_v42 = vpop.permute.xlu0 %2539 }
 0x381   : > { %v2552_v61 = vsel %vm645_vm10, %v2551_v29, %v2504_v52  ;;  %v2561_v39 = vsel %vm649_vm12, %v2560_v18, %v2540_v42  ;;  %v2570_v58 = vld [vmem:[#allocation3 + $0x20] sm:$0xff] }
 0x382   : > { %v2775_v55 = vpack.c.bf16 %v2572_v12, %v2570_v58  ;;  %v2562_v44 = vsel %vm651_vm13, %v2561_v39, %v4559_v14  ;;  %v2553_v63 = vsel %vm647_vm11, %v2552_v61, %v4563_v20  ;;  %v435_v20 = vld [vmem:[%s4695_s1] sm:$0xff] }
 0x384   : > { %v2512_v33 = vpop.permute.xlu1 %2511  ;;  %2776 = vmatpush1.bf16.msra.mxu0 %v2775_v55  ;;  %v2548_v51 = vpop.permute.xlu0 %2547 }
 0x385   : > { %v2554_v53 = vsel %vm649_vm12, %v2553_v63, %v2512_v33  ;;  %v2563_v28 = vsel %vm653_vm14, %v2562_v44, %v2548_v51 }
 0x386   : > { %2565 = vst [vmem:[#allocation3 + $0x48] sm:$0xf] %v2563_v28  ;;  %v2555_v35 = vsel %vm651_vm13, %v2554_v53, %v4565_v62 }
 0x388   : > { %v2520_v9 = vpop.permute.xlu1 %2519 }
 0x389   : > { %v2556_v41 = vsel %vm653_vm14, %v2555_v35, %v2520_v9 }
 0x38a   : > { %2564 = vst [vmem:[#allocation3 + $0x40] sm:$0xf] %v2556_v41 }
 0x38d   : > { %v2575_v14 = vld [vmem:[#allocation3 + $0x48] sm:$0xf] }
 0x38e   : > { %2759 = vmatprep.subr.msk.mxu0 %vm2585_vm15, %v2575_v14 }
 0x391   : > { %v2574_v24 = vld [vmem:[#allocation3 + $0x40] sm:$0xf] }
 0x392   : > { %2760 = vmatpush1.msk.msra.mxu0 %vm2585_vm15, %v2574_v24 }
 0x393   : > { %2761 = vmatmul.mubr.msk.f32.vlgmr.msra.gmra.mrb[0].mxu0 %vm2581_vm0, %v435_v20 }
 0x395   : > { %v2579_v43 = vpop.permute.xlu0 %2578 }
 0x466   : > { %v2658_v62 = vpop.f32.mrb[0].mxu0 }
 0x467   : > { %v2659_v25 = vadd.f32 %v2658_v62, %v2579_v43  ;;  %v2660_v57 = vpop.f32.mrb[1].mxu0 }
 0x468   : > { %v2661_v4 = vadd.f32 %v2660_v57, %v2579_v43 }
 0x469   : > { %2663 = vst [vmem:[%s188_s4] sm:$0xff] %v2659_v25 }
 0x46a   : > { %2664 = vst [vmem:[%s188_s4 + $0x8] sm:$0xff] %v2661_v4 }
 0x46b   : > { %2884 = shalt.err (!%p2881_p2)
}
 0x46c   : > { %s2885_s5 = scalar_lea.hbm %s4650_s8, 256  ;;  %s2889_s28 = scalar_lea.hbm %s4697_s3, 512 }
 0x46d   : > { %p2886_p4 = scmp.ne.s32.totalorder %s4650_s8, %s2885_s5  ;;  %p2890_p9 = scmp.lt.u32.totalorder %s4650_s8, %s4697_s3 }
 0x46e   : > { %p2891_p1 = scmp.lt.u32.totalorder %s2889_s28, %s2885_s5  ;;  %p2893_p6 = scmp.lt.u32.totalorder %s2885_s5, %s4650_s8 }
 0x46f   : > { %p2887_p5 = pnand %p2886_p4, %p4744_p11 }
 0x470   : > { %p2892_p3 = por %p2891_p1, %p2890_p9 }
 0x471   : > { %p2888_p7 = pneg %p2887_p5 }
 0x472   : > { %p2894_p12 = por %p2893_p6, %p2892_p3 }
 0x474   : > { %p2895_p13 = pnand %p2894_p12, %p2888_p7 }
 0x476   : > { %2898 = shalt.err (!%p2895_p13)
}
 0x477   : > { %2779 = dma.vmem_to_hbm [thread:$0]  (%p4744_p11), %s4652_s23, 256, %s4650_s8, %s2666_s17  }
 0x478 PF: > { %s2692_s9 = sand.u32 1, %s2925_s12   ;;  %p4745_p8 = scmp.ne.s32.totalorder %s4714_s25, 0 }
 0x479   : > { %p4746_p10 = scmp.ge.s32.totalorder %s2937_s15, 2  ;;  %s2693_s10 = scalar_lea.sflag [#allocation6], %s2692_s9 }
 0x47b   : > { %p2786_p0 = pnand %p4746_p10, %p4745_p8 }
 0x47d   : > { %2920 = dma.done.wait (!%p2786_p0), %s2693_s10, 256  }
 0x47e   : > { %2922 = vsyncadd (!%p2786_p0), %s2693_s10, 4294967040  ;;  %p16_p2 = scmp.ge.s32.totalorder %s3003_s18, 4   ;;  %s4747_s12 = smov %s2929_s13 }
 0x47f   : > { %s4748_s13 = smov %s2933_s14  ;;  %s4749_s14 = smov %s3015_s21 }
 0x480   : > { %s4750_s15 = smov %s3003_s18  ;;  %18 = sbr.rel (!%p16_p2) target bundleno = 5 (0x5), region = 77 }
 0x487   :  { %2698 = vsyncpa [#allocation5], 1 }
 0x488   :  { %2700 = vsyncpa [#allocation5 + $0x1], 1 }
 0x489   :  { %2701 = vsyncpa [#allocation6], 1 }
 0x48a   :  { %2703 = vsyncpa [#allocation6 + $0x1], 1 }

</bundles_post_ra>
